<compile_context>
chip_gen: v5e
topology: v5e:2x2
jax: 0.10.0
libtpu: 0.0.40
codegen_flags: <defaults>
</compile_context>

<pallas_src>
import math
import re

import jax
import jax.numpy as jnp
from jax.experimental import pallas as pl
from jax.experimental.pallas import tpu as pltpu


# ----------------------------------------------------------------------------- kernel


def _make_kernel(epilogue_dtype):
    """Build the fused 4-layer MLP kernel with the bias/LeakyReLU epilogue in `epilogue_dtype`."""
    ep = epilogue_dtype
    bf16 = jnp.bfloat16
    f32 = jnp.float32

    def kernel(z_ref,
               w1_ref, b1_ref,
               w2_ref, b2_ref,
               w3_ref, b3_ref,
               w4_ref,
               out_ref):
        def lrelu(x):
            # identical to LeakyReLU(0.2) for slope < 1, single VALU max instead of cmp+select
            return jnp.maximum(x, 0.2 * x)

        x = z_ref[...]                                                        # bf16 (bm, nz)
        h = jnp.dot(x, w1_ref[...], preferred_element_type=f32).astype(ep) + b1_ref[...]
        h = lrelu(h)
        h = jnp.dot(h.astype(bf16), w2_ref[...], preferred_element_type=f32).astype(ep) + b2_ref[...]
        h = lrelu(h)
        h = jnp.dot(h.astype(bf16), w3_ref[...], preferred_element_type=f32).astype(ep) + b3_ref[...]
        h = lrelu(h)

        # Final layer (ndf -> nez=1): contract the (1, ndf) PyTorch-native weight row against h's
        # feature axis -> (1, bm); result is lane-dense so the output store is full-width.
        o = jax.lax.dot_general(
            w4_ref[...], h.astype(bf16),
            dimension_numbers=(((1,), (1,)), ((), ())),
            preferred_element_type=f32)                                       # (1, bm)
        out_ref[...] = o[None].astype(out_ref.dtype)                          # (1, 1, bm)

    return kernel


# ----------------------------------------------------------------------------- tiling policy


def _round_up(x, m):
    return ((x + m - 1) // m) * m


def _cdiv(a, b):
    return (a + b - 1) // b


def _tpu_generation():
    """Best-effort TPU generation from device_kind (e.g. 'TPU v5e' -> 5, 'TPU7x' -> 7)."""
    try:
        kind = jax.devices()[0].device_kind.lower()
    except Exception:
        return 6
    m = re.search(r"(\d+)", kind)
    return int(m.group(1)) if m else 6


def _choose_tiling(B, gen):
    """Return (bm, padded_B).  Single-TC chips want few fat steps; v7x wants an even grid."""
    if gen >= 7:
        # 2 TensorCores: keep grid_m even so the "parallel" batch axis shards across both cores.
        if B <= 16:
            bm = max(8, _round_up(B, 8))
            return bm, bm
        grid_m = 2 * max(1, _cdiv(B, 2 * 512))      # even number of ~<=512-row tiles
        bm = _round_up(_cdiv(B, grid_m), 8)
        return bm, grid_m * bm
    # v5e / v6e: per-step overhead (~0.35us) beats the tiny z-DMA we'd hide -> maximal bm.
    if B <= 512:
        bm = max(8, _round_up(B, 8))
        return bm, bm
    bm = 512
    return bm, _round_up(B, bm)


# ----------------------------------------------------------------------------- wrapper


def nete_forward(z, params, *, bm=None, epilogue_dtype=None):
    """Pallas forward for _netE.  z: (B, nz) float32.  Returns torch-.squeeze()'d energies."""
    (w1, b1), (w2, b2), (w3, b3), (w4_row, b4) = params
    B, nz = z.shape
    ndf = w1.shape[1]
    nez = w4_row.shape[0]
    assert nez == 1, "kernel is specialised to the module default nez == 1"

    gen = _tpu_generation()
    if epilogue_dtype is None:
        # bf16 VPU exists on v6e/v7x; v5e keeps the f32 epilogue.
        epilogue_dtype = jnp.bfloat16 if gen >= 6 else jnp.float32
    if bm is None:
        bm, padded_B = _choose_tiling(B, gen)
    else:
        padded_B = _round_up(B, bm)
    grid_m = padded_B // bm

    # Cast z to bf16 at the boundary (halves the z DMA; reference numerics already do this).
    zb = z.astype(jnp.bfloat16)
    if padded_B != B:
        zb = jnp.pad(zb, ((0, padded_B - B), (0, 0)))

    b1e = b1.astype(epilogue_dtype)
    b2e = b2.astype(epilogue_dtype)
    b3e = b3.astype(epilogue_dtype)

    kernel = _make_kernel(epilogue_dtype)

    zmap = lambda i: (i, 0)          # batch tile i
    pmap = lambda i: (0, 0)          # weights/biases: same block every step (stay resident)

    out = pl.pallas_call(
        kernel,
        out_shape=jax.ShapeDtypeStruct((grid_m, 1, bm), jnp.float32),
        grid_spec=pltpu.PrefetchScalarGridSpec(
            num_scalar_prefetch=0,
            grid=(grid_m,),
            in_specs=[
                pl.BlockSpec((bm, nz), zmap),
                pl.BlockSpec((nz, ndf), pmap),
                pl.BlockSpec((1, ndf), pmap),
                pl.BlockSpec((ndf, ndf), pmap),
                pl.BlockSpec((1, ndf), pmap),
                pl.BlockSpec((ndf, ndf), pmap),
                pl.BlockSpec((1, ndf), pmap),
                pl.BlockSpec((1, ndf), pmap),   # w4 stored PyTorch-style as (nez, ndf) row
            ],
            out_specs=pl.BlockSpec((1, 1, bm), lambda i: (i, 0, 0)),
        ),
        compiler_params=pltpu.CompilerParams(
            dimension_semantics=("parallel",)),
    )(zb, w1, b1e, w2, b2e, w3, b3e, w4_row)

    # Fold the final (1, 1) bias here (saves a whole VMEM tile for one scalar), drop padding,
    # then torch .squeeze(): drops ALL size-1 dims (nez=1 -> (B,); B==1 -> scalar).
    energies = out.reshape(padded_B, 1)[:B] + b4
    return jnp.squeeze(energies)


# ----------------------------------------------------------------------------- params / reference


def init_params(key, nz=128, ndf=512, nez=1):
    """Deterministic init mimicking torch.nn.Linear default (uniform +-1/sqrt(fan_in)).
    Hidden-layer weights stored transposed as (in, out) bf16; final layer stored PyTorch-style
    as a (nez, ndf) bf16 row.  Biases kept in f32 (the wrapper casts per-chip)."""
    assert nez == 1
    params = []
    for fan_in, fan_out in [(nz, ndf), (ndf, ndf), (ndf, ndf)]:
        key, kw, kb = jax.random.split(key, 3)
        bound = 1.0 / math.sqrt(fan_in)
        w = jax.random.uniform(kw, (fan_in, fan_out), jnp.float32, -bound, bound)
        b = jax.random.uniform(kb, (1, fan_out), jnp.float32, -bound, bound)
        params.append((w.astype(jnp.bfloat16), b))
    key, kw, kb = jax.random.split(key, 3)
    bound = 1.0 / math.sqrt(ndf)
    w4 = jax.random.uniform(kw, (nez, ndf), jnp.float32, -bound, bound)
    b4 = jax.random.uniform(kb, (1, nez), jnp.float32, -bound, bound)
    params.append((w4.astype(jnp.bfloat16), b4))
    return params


def nete_reference(z, params, epilogue_dtype):
    """Plain-JAX reference with exactly the kernel's numerics (bf16 dot operands, f32 accumulation,
    epilogue at `epilogue_dtype`)."""
    (w1, b1), (w2, b2), (w3, b3), (w4_row, b4) = params
    ep = epilogue_dtype
    bf16, f32 = jnp.bfloat16, jnp.float32

    def lrelu(x):
        return jnp.maximum(x, 0.2 * x)

    h = jnp.dot(z.astype(bf16), w1, preferred_element_type=f32).astype(ep) + b1.astype(ep)
    h = lrelu(h)
    h = jnp.dot(h.astype(bf16), w2, preferred_element_type=f32).astype(ep) + b2.astype(ep)
    h = lrelu(h)
    h = jnp.dot(h.astype(bf16), w3, preferred_element_type=f32).astype(ep) + b3.astype(ep)
    h = lrelu(h)
    o = jnp.dot(h.astype(bf16), w4_row.T, preferred_element_type=f32)          # (B, nez)
    return jnp.squeeze(o + b4)


# ----------------------------------------------------------------------------- test


if __name__ == "__main__":
    key = jax.random.PRNGKey(0)
    kp, kz1, kz2, kz3 = jax.random.split(key, 4)

    nz, ndf, nez = 128, 512, 1   # module defaults (nz/ndf are architectural, not batch)
    params = init_params(kp, nz=nz, ndf=ndf, nez=nez)
    ep = jnp.bfloat16 if _tpu_generation() >= 6 else jnp.float32

    def check(B, kz):
        z = jax.random.normal(kz, (B, nz), dtype=jnp.float32)
        out = jax.block_until_ready(nete_forward(z, params))
        ref = nete_reference(z, params, ep)
        assert out.shape == ref.shape == (B,), (out.shape, ref.shape)
        err = float(jnp.max(jnp.abs(out - ref)))
        assert jnp.allclose(out, ref, atol=2e-3, rtol=2e-3), f"B={B} max abs err {err}"

    # Small batch (single-tile path).
    check(8, kz1)
    # Awkward batch: exercises the zero-pad + slice path (and an even grid on v7x).
    check(20, kz2)
    # Moderate batch: exercises the multi-step / megacore-sharded path depending on chip.
    check(512, kz3)

    print("KERNEL_OK")
</pallas_src>

<mosaic_0001>
module attributes {stable_mosaic.version = 11 : i64} {
  func.func @kernel(%arg0: i32, %arg1: memref<8x128xbf16, #tpu.memory_space<vmem>>, %arg2: memref<128x512xbf16, #tpu.memory_space<vmem>>, %arg3: memref<1x512xbf16, #tpu.memory_space<vmem>>, %arg4: memref<512x512xbf16, #tpu.memory_space<vmem>>, %arg5: memref<1x512xbf16, #tpu.memory_space<vmem>>, %arg6: memref<512x512xbf16, #tpu.memory_space<vmem>>, %arg7: memref<1x512xbf16, #tpu.memory_space<vmem>>, %arg8: memref<1x512xbf16, #tpu.memory_space<vmem>>, %arg9: memref<1x1x8xf32, #tpu.memory_space<vmem>>) attributes {dimension_semantics = [#tpu.dimension_semantics<parallel>], iteration_bounds = array<i64: 1>, scalar_prefetch = 0 : i64, scratch_operands = 0 : i64, tpu.core_type = #tpu.core_type<tc>, window_params = [{transform_indices = @transform_0, window_bounds = array<i64: 8, 128>}, {pipeline_mode = #tpu.pipeline_mode<synchronous>, transform_indices = @transform_1, window_bounds = array<i64: 128, 512>}, {pipeline_mode = #tpu.pipeline_mode<synchronous>, transform_indices = @transform_2, window_bounds = array<i64: 1, 512>}, {pipeline_mode = #tpu.pipeline_mode<synchronous>, transform_indices = @transform_3, window_bounds = array<i64: 512, 512>}, {pipeline_mode = #tpu.pipeline_mode<synchronous>, transform_indices = @transform_4, window_bounds = array<i64: 1, 512>}, {pipeline_mode = #tpu.pipeline_mode<synchronous>, transform_indices = @transform_5, window_bounds = array<i64: 512, 512>}, {pipeline_mode = #tpu.pipeline_mode<synchronous>, transform_indices = @transform_6, window_bounds = array<i64: 1, 512>}, {pipeline_mode = #tpu.pipeline_mode<synchronous>, transform_indices = @transform_7, window_bounds = array<i64: 1, 512>}, {transform_indices = @transform_8, window_bounds = array<i64: 1, 1, 8>}]} {
    %c0 = arith.constant 0 : index
    %c0_0 = arith.constant 0 : index
    %0 = vector.load %arg1[%c0, %c0_0] : memref<8x128xbf16, #tpu.memory_space<vmem>>, vector<8x128xbf16>
    %c0_1 = arith.constant 0 : index
    %c0_2 = arith.constant 0 : index
    %1 = vector.load %arg2[%c0_1, %c0_2] : memref<128x512xbf16, #tpu.memory_space<vmem>>, vector<128x512xbf16>
    %cst = arith.constant dense<0.000000e+00> : vector<8x512xf32>
    %2 = tpu.matmul %0, %1, %cst {dimension_numbers = #tpu.dot_dimension_numbers<[1], [0], [0], [1], [0, 0, 1, 1], [], []>} : vector<8x128xbf16>, vector<128x512xbf16>, vector<8x512xf32> -> vector<8x512xf32>
    %3 = arith.truncf %2 : vector<8x512xf32> to vector<8x512xbf16>
    %c0_3 = arith.constant 0 : index
    %c0_4 = arith.constant 0 : index
    %4 = vector.load %arg3[%c0_3, %c0_4] : memref<1x512xbf16, #tpu.memory_space<vmem>>, vector<1x512xbf16>
    %5 = vector.broadcast %4 : vector<1x512xbf16> to vector<8x512xbf16>
    %6 = arith.addf %3, %5 : vector<8x512xbf16>
    %cst_5 = arith.constant 2.001950e-01 : bf16
    %7 = vector.broadcast %cst_5 : bf16 to vector<8x512xbf16>
    %8 = arith.mulf %7, %6 : vector<8x512xbf16>
    %9 = arith.maximumf %6, %8 : vector<8x512xbf16>
    %c0_6 = arith.constant 0 : index
    %c0_7 = arith.constant 0 : index
    %10 = vector.load %arg4[%c0_6, %c0_7] : memref<512x512xbf16, #tpu.memory_space<vmem>>, vector<512x512xbf16>
    %cst_8 = arith.constant dense<0.000000e+00> : vector<8x512xf32>
    %11 = tpu.matmul %9, %10, %cst_8 {dimension_numbers = #tpu.dot_dimension_numbers<[1], [0], [0], [1], [0, 0, 1, 1], [], []>} : vector<8x512xbf16>, vector<512x512xbf16>, vector<8x512xf32> -> vector<8x512xf32>
    %12 = arith.truncf %11 : vector<8x512xf32> to vector<8x512xbf16>
    %c0_9 = arith.constant 0 : index
    %c0_10 = arith.constant 0 : index
    %13 = vector.load %arg5[%c0_9, %c0_10] : memref<1x512xbf16, #tpu.memory_space<vmem>>, vector<1x512xbf16>
    %14 = vector.broadcast %13 : vector<1x512xbf16> to vector<8x512xbf16>
    %15 = arith.addf %12, %14 : vector<8x512xbf16>
    %cst_11 = arith.constant 2.001950e-01 : bf16
    %16 = vector.broadcast %cst_11 : bf16 to vector<8x512xbf16>
    %17 = arith.mulf %16, %15 : vector<8x512xbf16>
    %18 = arith.maximumf %15, %17 : vector<8x512xbf16>
    %c0_12 = arith.constant 0 : index
    %c0_13 = arith.constant 0 : index
    %19 = vector.load %arg6[%c0_12, %c0_13] : memref<512x512xbf16, #tpu.memory_space<vmem>>, vector<512x512xbf16>
    %cst_14 = arith.constant dense<0.000000e+00> : vector<8x512xf32>
    %20 = tpu.matmul %18, %19, %cst_14 {dimension_numbers = #tpu.dot_dimension_numbers<[1], [0], [0], [1], [0, 0, 1, 1], [], []>} : vector<8x512xbf16>, vector<512x512xbf16>, vector<8x512xf32> -> vector<8x512xf32>
    %21 = arith.truncf %20 : vector<8x512xf32> to vector<8x512xbf16>
    %c0_15 = arith.constant 0 : index
    %c0_16 = arith.constant 0 : index
    %22 = vector.load %arg7[%c0_15, %c0_16] : memref<1x512xbf16, #tpu.memory_space<vmem>>, vector<1x512xbf16>
    %23 = vector.broadcast %22 : vector<1x512xbf16> to vector<8x512xbf16>
    %24 = arith.addf %21, %23 : vector<8x512xbf16>
    %cst_17 = arith.constant 2.001950e-01 : bf16
    %25 = vector.broadcast %cst_17 : bf16 to vector<8x512xbf16>
    %26 = arith.mulf %25, %24 : vector<8x512xbf16>
    %27 = arith.maximumf %24, %26 : vector<8x512xbf16>
    %c0_18 = arith.constant 0 : index
    %c0_19 = arith.constant 0 : index
    %28 = vector.load %arg8[%c0_18, %c0_19] : memref<1x512xbf16, #tpu.memory_space<vmem>>, vector<1x512xbf16>
    %cst_20 = arith.constant dense<0.000000e+00> : vector<1x8xf32>
    %29 = tpu.matmul %28, %27, %cst_20 {dimension_numbers = #tpu.dot_dimension_numbers<[1], [1], [0], [0], [0, 0, 1, 0], [], []>} : vector<1x512xbf16>, vector<8x512xbf16>, vector<1x8xf32> -> vector<1x8xf32>
    %30 = vector.shape_cast %29 : vector<1x8xf32> to vector<1x1x8xf32>
    %c0_21 = arith.constant 0 : index
    %c0_22 = arith.constant 0 : index
    %c0_23 = arith.constant 0 : index
    %31 = vector.load %arg9[%c0_21, %c0_22, %c0_23] : memref<1x1x8xf32, #tpu.memory_space<vmem>>, vector<1x1x8xf32>
    tpu.vector_store %arg9[%c0_21, %c0_22, %c0_23], %30 {strides = array<i32>} : memref<1x1x8xf32, #tpu.memory_space<vmem>>, vector<1x1x8xf32>,
    return
  }
  func.func @transform_0(%arg0: i32) -> (i32, i32) {
    %c0_i32 = arith.constant 0 : i32
    %c0_i32_0 = arith.constant 0 : i32
    return %arg0, %c0_i32 : i32, i32
  }
  func.func @transform_1(%arg0: i32) -> (i32, i32) {
    %c0_i32 = arith.constant 0 : i32
    %c0_i32_0 = arith.constant 0 : i32
    %c0_i32_1 = arith.constant 0 : i32
    return %c0_i32, %c0_i32_0 : i32, i32
  }
  func.func @transform_2(%arg0: i32) -> (i32, i32) {
    %c0_i32 = arith.constant 0 : i32
    %c0_i32_0 = arith.constant 0 : i32
    %c0_i32_1 = arith.constant 0 : i32
    return %c0_i32, %c0_i32_0 : i32, i32
  }
  func.func @transform_3(%arg0: i32) -> (i32, i32) {
    %c0_i32 = arith.constant 0 : i32
    %c0_i32_0 = arith.constant 0 : i32
    %c0_i32_1 = arith.constant 0 : i32
    return %c0_i32, %c0_i32_0 : i32, i32
  }
  func.func @transform_4(%arg0: i32) -> (i32, i32) {
    %c0_i32 = arith.constant 0 : i32
    %c0_i32_0 = arith.constant 0 : i32
    %c0_i32_1 = arith.constant 0 : i32
    return %c0_i32, %c0_i32_0 : i32, i32
  }
  func.func @transform_5(%arg0: i32) -> (i32, i32) {
    %c0_i32 = arith.constant 0 : i32
    %c0_i32_0 = arith.constant 0 : i32
    %c0_i32_1 = arith.constant 0 : i32
    return %c0_i32, %c0_i32_0 : i32, i32
  }
  func.func @transform_6(%arg0: i32) -> (i32, i32) {
    %c0_i32 = arith.constant 0 : i32
    %c0_i32_0 = arith.constant 0 : i32
    %c0_i32_1 = arith.constant 0 : i32
    return %c0_i32, %c0_i32_0 : i32, i32
  }
  func.func @transform_7(%arg0: i32) -> (i32, i32) {
    %c0_i32 = arith.constant 0 : i32
    %c0_i32_0 = arith.constant 0 : i32
    %c0_i32_1 = arith.constant 0 : i32
    return %c0_i32, %c0_i32_0 : i32, i32
  }
  func.func @transform_8(%arg0: i32) -> (i32, i32, i32) {
    %c0_i32 = arith.constant 0 : i32
    %c0_i32_0 = arith.constant 0 : i32
    %c0_i32_1 = arith.constant 0 : i32
    return %arg0, %c0_i32, %c0_i32_0 : i32, i32, i32
  }
}

</mosaic_0001>

<bundles_post_ra>
// kernel: tpu_custom_call.1
= control target key start
LH: loop header
LB: loop body
LE: loop exit
PB: predicated region body
PF: predicated region fallthrough
CT: control target
= control target key end

     0   :  { %13 = vsyncpa [#allocation3], 0  ;;  %s4396_s0 = inlined_call_operand.hbm [shape: bf16[8,128], index: 0, kind: input, shape index: {}]   ;;  %s4397_s1 = inlined_call_operand.hbm [shape: bf16[128,512], index: 1, kind: input, shape index: {}]   ;;  %s4398_s2 = inlined_call_operand.hbm [shape: bf16[1,512], index: 2, kind: input, shape index: {}]   ;;  %s4399_s3 = inlined_call_operand.hbm [shape: bf16[512,512], index: 3, kind: input, shape index: {}]   ;;  %s4400_s4 = inlined_call_operand.hbm [shape: bf16[1,512], index: 4, kind: input, shape index: {}]   ;;  %s4401_s5 = inlined_call_operand.hbm [shape: bf16[512,512], index: 5, kind: input, shape index: {}]   ;;  %s4402_s6 = inlined_call_operand.vmem [shape: bf16[1,512], index: 6, kind: input, shape index: {}]   ;;  %s4403_s7 = inlined_call_operand.hbm [shape: bf16[1,512], index: 7, kind: input, shape index: {}]   ;;  %s4404_s8 = inlined_call_operand.hbm [shape: f32[1,1,8], index: 8, kind: output, shape index: {}]  }
   0x1   :  { %14 = vsyncpa [#allocation6], 0 }
   0x2   :  { %15 = vsyncpa [#allocation9], 0 }
   0x3   :  { %16 = vsyncpa [#allocation12], 0  ;;  %s33_s29 = sshll.u32 %s4397_s1, 4  ;;  %s34_s29 = int_to_ptr.hbm [resolvable:$true] %s33_s29 }
   0x4   :  { %17 = vsyncpa [#allocation4], 0  ;;  %s4237_s30 = smov [#allocation5]   ;;  %s57_s12 = sshll.u32 %s4399_s3, 4  ;;  %s58_s12 = int_to_ptr.hbm [resolvable:$true] %s57_s12 }
   0x5   :  { %s35_s9 = sshll.u32 %s4237_s30, 4  ;;  %s4238_s13 = smov 256   ;;  %s36_s9 = int_to_ptr.vmem [resolvable:$true] %s35_s9 }
   0x6   :  { %s4239_s14 = smov 16   ;;  %s4240_s15 = smov [#allocation8]  }
   0x7   :  { %41 = dma.hbm_to_vmem [thread:$0]  %s34_s29, 4096, %s36_s9, [#allocation6], %s4238_s13, %s4238_s13, %s4239_s14  }
   0x8   :  { %s59_s16 = sshll.u32 %s4240_s15, 4  ;;  %s81_s19 = sshll.u32 %s4401_s5, 4  ;;  %s60_s16 = int_to_ptr.vmem [resolvable:$true] %s59_s16  ;;  %s82_s19 = int_to_ptr.hbm [resolvable:$true] %s81_s19 }
   0x9   :  { %65 = dma.hbm_to_vmem [thread:$0]  %s58_s12, 16384, %s60_s16, [#allocation9], %s4238_s13, %s4238_s13, %s4239_s14  }
   0xa   :  { %s23_s21 = sshll.u32 %s4396_s0, 4  ;;  %s4241_s22 = smov [#allocation11]   ;;  %s24_s21 = int_to_ptr.hbm [resolvable:$true] %s23_s21 }
   0xb   :  { %s83_s23 = sshll.u32 %s4241_s22, 4  ;;  %s4242_s3 = smov [#allocation2]   ;;  %s84_s23 = int_to_ptr.vmem [resolvable:$true] %s83_s23 }
   0xc   :  { %89 = dma.hbm_to_vmem [thread:$0]  %s82_s19, 16384, %s84_s23, [#allocation12], %s4238_s13, %s4238_s13, %s4239_s14  }
   0xd   :  { %s25_s24 = sshll.u32 %s4242_s3, 4  ;;  %s47_s27 = sshll.u32 %s4398_s2, 4  ;;  %s26_s24 = int_to_ptr.vmem [resolvable:$true] %s25_s24  ;;  %s48_s27 = int_to_ptr.hbm [resolvable:$true] %s47_s27 }
   0xe   :  { %28 = dma.hbm_to_vmem [thread:$0]  %s24_s21, 64, %s26_s24, [#allocation3]  }
   0xf   :  { %s71_s29 = sshll.u32 %s4400_s4, 4  ;;  %s4243_s30 = smov [#allocation7]   ;;  %s72_s29 = int_to_ptr.hbm [resolvable:$true] %s71_s29 }
  0x10   :  { %s49_s0 = sshll.u32 %s4243_s30, 4  ;;  %s4244_s9 = smov [#allocation10]   ;;  %s50_s0 = int_to_ptr.vmem [resolvable:$true] %s49_s0 }
  0x11   :  { %52 = dma.hbm_to_vmem [thread:$0]  %s48_s27, 64, %s50_s0, [#allocation6]  }
  0x12   :  { %s73_s10 = sshll.u32 %s4244_s9, 4  ;;  %s97_s13 = sshll.u32 %s4403_s7, 4  ;;  %s74_s10 = int_to_ptr.vmem [resolvable:$true] %s73_s10  ;;  %s98_s13 = int_to_ptr.hbm [resolvable:$true] %s97_s13 }
  0x13   :  { %76 = dma.hbm_to_vmem [thread:$0]  %s72_s29, 64, %s74_s10, [#allocation9]  }
  0x14   :  { %s4245_s2 = smov [#allocation13]  }
  0x15   :  { %s99_s14 = sshll.u32 %s4245_s2, 4  ;;  %s100_s14 = int_to_ptr.vmem [resolvable:$true] %s99_s14 }
  0x16   :  { %102 = dma.hbm_to_vmem [thread:$0]  %s98_s13, 64, %s100_s14, [#allocation12]  }
  0x17   :  { %4227 = dma.done.wait [#allocation3], 64  }
  0x18   :  { %4228 = vsyncadd [#allocation3], 4294967232 }
  0x19   :  { %4229 = dma.done.wait [#allocation6], 4160  }
  0x1a   :  { %4230 = vsyncadd [#allocation6], 4294963136 }
  0x1b   :  { %4231 = dma.done.wait [#allocation9], 16448  }
  0x1c   :  { %4232 = vsyncadd [#allocation9], 4294950848 }
  0x1d   :  { %4233 = dma.done.wait [#allocation12], 16448  }
  0x1e   :  { %4234 = vsyncadd [#allocation12], 4294950848  ;;  %v2699_v0 = vld [vmem:[#allocation5 + $0xe0] sm:$0xf]  ;;  %v3767_v1 = vld [vmem:[#allocation5 + $0xec] sm:$0xf0] }
  0x1f   :  { %v3765_v2 = vld [vmem:[#allocation5 + $0xe4] sm:$0xf]  ;;  %v2700_v3 = vor.u32 %v3767_v1, %v2699_v0  ;;  %v2701_v4 = vld [vmem:[#allocation5 + $0xf0] sm:$0xf0]  ;;  %v2707_v5 = vld [vmem:[#allocation5 + $0xe8] sm:$0xf] }
  0x20   :  { %v3768_v6 = vld [vmem:[#allocation5 + $0xf4] sm:$0xf0]  ;;  %v2704_v7 = vor.u32 %v3765_v2, %v2701_v4  ;;  %v3766_v9 = vld [vmem:[#allocation5 + $0xec] sm:$0xf]  ;;  %v2709_v10 = vld [vmem:[#allocation5 + $0xf8] sm:$0xf0] }
  0x21   :  { %v2708_v8 = vor.u32 %v3768_v6, %v2707_v5  ;;  %v2683_v11 = vld [vmem:[#allocation5 + $0xc0] sm:$0xf]  ;;  %325 = vmatpush.bf16.msra.mxu0 %v2700_v3  ;;  %v2712_v12 = vor.u32 %v3766_v9, %v2709_v10  ;;  %v3763_v13 = vld [vmem:[#allocation5 + $0xcc] sm:$0xf0]  ;;  %v3761_v14 = vld [vmem:[#allocation5 + $0xc4] sm:$0xf] }
  0x22   :  { %v2685_v15 = vld [vmem:[#allocation5 + $0xd0] sm:$0xf0]  ;;  %338 = vmatpush.bf16.msra.mxu1 %v2704_v7  ;;  %v2684_v16 = vor.u32 %v3763_v13, %v2683_v11  ;;  %v2691_v18 = vld [vmem:[#allocation5 + $0xc8] sm:$0xf]  ;;  %v3764_v19 = vld [vmem:[#allocation5 + $0xd4] sm:$0xf0] }
  0x23   :  { %351 = vmatpush.bf16.msra.mxu2 %v2708_v8  ;;  %v2688_v17 = vor.u32 %v3761_v14, %v2685_v15  ;;  %v3762_v20 = vld [vmem:[#allocation5 + $0xcc] sm:$0xf]  ;;  %364 = vmatpush.bf16.msra.mxu3 %v2712_v12  ;;  %v2692_v21 = vor.u32 %v3764_v19, %v2691_v18  ;;  %v2693_v22 = vld [vmem:[#allocation5 + $0xd8] sm:$0xf0]  ;;  %v2667_v23 = vld [vmem:[#allocation5 + $0xa0] sm:$0xf] }
  0x24   :  { %v3759_v24 = vld [vmem:[#allocation5 + $0xac] sm:$0xf0]  ;;  %v2696_v25 = vor.u32 %v3762_v20, %v2693_v22  ;;  %v3757_v26 = vld [vmem:[#allocation5 + $0xa4] sm:$0xf]  ;;  %v2669_v27 = vld [vmem:[#allocation5 + $0xb0] sm:$0xf0] }
  0x25   :  { %v2675_v28 = vld [vmem:[#allocation5 + $0xa8] sm:$0xf]  ;;  %326 = vmatpush.bf16.msra.mxu0 %v2684_v16  ;;  %v2668_v29 = vor.u32 %v3759_v24, %v2667_v23  ;;  %v3760_v30 = vld [vmem:[#allocation5 + $0xb4] sm:$0xf0]  ;;  %v3758_v31 = vld [vmem:[#allocation5 + $0xac] sm:$0xf]  ;;  %v2672_v33 = vor.u32 %v3757_v26, %v2669_v27 }
  0x26   :  { %v2677_v32 = vld [vmem:[#allocation5 + $0xb8] sm:$0xf0]  ;;  %339 = vmatpush.bf16.msra.mxu1 %v2688_v17  ;;  %v2676_v34 = vor.u32 %v3760_v30, %v2675_v28  ;;  %v2651_v35 = vld [vmem:[#allocation5 + $0x80] sm:$0xf]  ;;  %v3755_v36 = vld [vmem:[#allocation5 + $0x8c] sm:$0xf0] }
  0x27   :  { %352 = vmatpush.bf16.msra.mxu2 %v2692_v21  ;;  %v3753_v37 = vld [vmem:[#allocation5 + $0x84] sm:$0xf]  ;;  %365 = vmatpush.bf16.msra.mxu3 %v2696_v25  ;;  %v2680_v38 = vor.u32 %v3758_v31, %v2677_v32  ;;  %v2653_v39 = vld [vmem:[#allocation5 + $0x90] sm:$0xf0]  ;;  %v2659_v40 = vld [vmem:[#allocation5 + $0x88] sm:$0xf]  ;;  %v2652_v44 = vor.u32 %v3755_v36, %v2651_v35 }
  0x28   :  { %v3756_v41 = vld [vmem:[#allocation5 + $0x94] sm:$0xf0]  ;;  %v3754_v42 = vld [vmem:[#allocation5 + $0x8c] sm:$0xf]  ;;  %v2661_v43 = vld [vmem:[#allocation5 + $0x98] sm:$0xf0]  ;;  %v2656_v45 = vor.u32 %v3753_v37, %v2653_v39 }
  0x29   :  { %327 = vmatpush.bf16.msra.mxu0 %v2668_v29  ;;  %v2660_v46 = vor.u32 %v3756_v41, %v2659_v40  ;;  %v2635_v47 = vld [vmem:[#allocation5 + $0x60] sm:$0xf]  ;;  %v3751_v48 = vld [vmem:[#allocation5 + $0x6c] sm:$0xf0]  ;;  %v3749_v49 = vld [vmem:[#allocation5 + $0x64] sm:$0xf]  ;;  %v2664_v50 = vor.u32 %v3754_v42, %v2661_v43 }
  0x2a   :  { %340 = vmatpush.bf16.msra.mxu1 %v2672_v33  ;;  %v2637_v51 = vld [vmem:[#allocation5 + $0x70] sm:$0xf0]  ;;  %v2643_v52 = vld [vmem:[#allocation5 + $0x68] sm:$0xf]  ;;  %v3752_v53 = vld [vmem:[#allocation5 + $0x74] sm:$0xf0]  ;;  %v2636_v56 = vor.u32 %v3751_v48, %v2635_v47 }
  0x2b   :  { %353 = vmatpush.bf16.msra.mxu2 %v2676_v34  ;;  %366 = vmatpush.bf16.msra.mxu3 %v2680_v38  ;;  %v3750_v54 = vld [vmem:[#allocation5 + $0x6c] sm:$0xf]  ;;  %v2645_v55 = vld [vmem:[#allocation5 + $0x78] sm:$0xf0]  ;;  %v2640_v57 = vor.u32 %v3749_v49, %v2637_v51  ;;  %v2644_v58 = vor.u32 %v3752_v53, %v2643_v52  ;;  %v2619_v59 = vld [vmem:[#allocation5 + $0x40] sm:$0xf] }
  0x2c   :  { %v3747_v60 = vld [vmem:[#allocation5 + $0x4c] sm:$0xf0]  ;;  %v3745_v61 = vld [vmem:[#allocation5 + $0x44] sm:$0xf]  ;;  %v2648_v62 = vor.u32 %v3750_v54, %v2645_v55  ;;  %v2621_v63 = vld [vmem:[#allocation5 + $0x50] sm:$0xf0] }
  0x2d   :  { %328 = vmatpush.bf16.msra.mxu0 %v2652_v44  ;;  %v2627_v0 = vld [vmem:[#allocation5 + $0x48] sm:$0xf]  ;;  %v3748_v1 = vld [vmem:[#allocation5 + $0x54] sm:$0xf0]  ;;  %v3746_v2 = vld [vmem:[#allocation5 + $0x4c] sm:$0xf]  ;;  %v2620_v4 = vor.u32 %v3747_v60, %v2619_v59  ;;  %v2624_v5 = vor.u32 %v3745_v61, %v2621_v63 }
  0x2e   :  { %341 = vmatpush.bf16.msra.mxu1 %v2656_v45  ;;  %v2629_v3 = vld [vmem:[#allocation5 + $0x58] sm:$0xf0]  ;;  %v2628_v6 = vor.u32 %v3748_v1, %v2627_v0  ;;  %v2603_v7 = vld [vmem:[#allocation5 + $0x20] sm:$0xf]  ;;  %v3743_v8 = vld [vmem:[#allocation5 + $0x2c] sm:$0xf0] }
  0x2f   :  { %354 = vmatpush.bf16.msra.mxu2 %v2660_v46  ;;  %367 = vmatpush.bf16.msra.mxu3 %v2664_v50  ;;  %v3741_v9 = vld [vmem:[#allocation5 + $0x24] sm:$0xf]  ;;  %v2632_v10 = vor.u32 %v3746_v2, %v2629_v3  ;;  %v2605_v11 = vld [vmem:[#allocation5 + $0x30] sm:$0xf0]  ;;  %v2611_v12 = vld [vmem:[#allocation5 + $0x28] sm:$0xf]  ;;  %v2604_v16 = vor.u32 %v3743_v8, %v2603_v7 }
  0x30   :  { %v3744_v13 = vld [vmem:[#allocation5 + $0x34] sm:$0xf0]  ;;  %v3742_v14 = vld [vmem:[#allocation5 + $0x2c] sm:$0xf]  ;;  %v2613_v15 = vld [vmem:[#allocation5 + $0x38] sm:$0xf0]  ;;  %v2608_v18 = vor.u32 %v3741_v9, %v2605_v11 }
  0x31   :  { %329 = vmatpush.bf16.msra.mxu0 %v2636_v56  ;;  %v2587_v17 = vld [vmem:[#allocation5] sm:$0xf]  ;;  %v2612_v19 = vor.u32 %v3744_v13, %v2611_v12  ;;  %v3739_v20 = vld [vmem:[#allocation5 + $0xc] sm:$0xf0]  ;;  %v3737_v21 = vld [vmem:[#allocation5 + $0x4] sm:$0xf]  ;;  %v2616_v23 = vor.u32 %v3742_v14, %v2613_v15 }
  0x32   :  { %342 = vmatpush.bf16.msra.mxu1 %v2640_v57  ;;  %v2589_v22 = vld [vmem:[#allocation5 + $0x10] sm:$0xf0]  ;;  %v2595_v24 = vld [vmem:[#allocation5 + $0x8] sm:$0xf]  ;;  %v3740_v25 = vld [vmem:[#allocation5 + $0x14] sm:$0xf0]  ;;  %v2588_v30 = vor.u32 %v3739_v20, %v2587_v17 }
  0x33   :  { %355 = vmatpush.bf16.msra.mxu2 %v2644_v58  ;;  %368 = vmatpush.bf16.msra.mxu3 %v2648_v62  ;;  %v3738_v26 = vld [vmem:[#allocation5 + $0xc] sm:$0xf]  ;;  %v2597_v27 = vld [vmem:[#allocation5 + $0x18] sm:$0xf0]  ;;  %v2827_v28 = vld [vmem:[#allocation8 + $0xe0] sm:$0xf]  ;;  %v2592_v33 = vor.u32 %v3737_v21, %v2589_v22  ;;  %v2596_v34 = vor.u32 %v3740_v25, %v2595_v24 }
  0x34   :  { %v3799_v29 = vld [vmem:[#allocation8 + $0xec] sm:$0xf0]  ;;  %v2955_v31 = vld [vmem:[#allocation8 + $0x1e0] sm:$0xf]  ;;  %v2600_v35 = vor.u32 %v3738_v26, %v2597_v27  ;;  %v132_v44 = vld [vmem:[#allocation2] sm:$0xf] }
  0x35   :  { %330 = vmatpush.bf16.msra.mxu0 %v2620_v4  ;;  %v3831_v32 = vld [vmem:[#allocation8 + $0x1ec] sm:$0xf0]  ;;  %v2828_v36 = vor.u32 %v3799_v29, %v2827_v28  ;;  %v2811_v37 = vld [vmem:[#allocation8 + $0xc0] sm:$0xf]  ;;  %s2572_s18 = sshll.u32 %s4404_s8, 4  ;;  %vm2563_vm0 = vcmask 57344   ;;  %s2573_s18 = int_to_ptr.hbm [resolvable:$true] %s2572_s18 }
  0x36   :  { %343 = vmatpush.bf16.msra.mxu1 %v2624_v5  ;;  %v3083_v38 = vld [vmem:[#allocation8 + $0x2e0] sm:$0xf]  ;;  %v3863_v39 = vld [vmem:[#allocation8 + $0x2ec] sm:$0xf0]  ;;  %v2956_v40 = vor.u32 %v3831_v32, %v2955_v31 }
  0x37   :  { %356 = vmatpush.bf16.msra.mxu2 %v2628_v6  ;;  %369 = vmatpush.bf16.msra.mxu3 %v2632_v10  ;;  %v3795_v41 = vld [vmem:[#allocation8 + $0xcc] sm:$0xf0]  ;;  %v3211_v42 = vld [vmem:[#allocation8 + $0x3e0] sm:$0xf]  ;;  %v3084_v47 = vor.u32 %v3863_v39, %v3083_v38 }
  0x38   :  { %v3895_v43 = vld [vmem:[#allocation8 + $0x3ec] sm:$0xf0]  ;;  %v2939_v45 = vld [vmem:[#allocation8 + $0x1c0] sm:$0xf]  ;;  %v2812_v48 = vor.u32 %v3795_v41, %v2811_v37 }
  0x39   :  { %331 = vmatpush.bf16.msra.mxu0 %v2604_v16  ;;  %v3827_v46 = vld [vmem:[#allocation8 + $0x1cc] sm:$0xf0]  ;;  %v3212_v49 = vor.u32 %v3895_v43, %v3211_v42  ;;  %v2795_v50 = vld [vmem:[#allocation8 + $0xa0] sm:$0xf] }
  0x3a   :  { %344 = vmatpush.bf16.msra.mxu1 %v2608_v18  ;;  %v3067_v51 = vld [vmem:[#allocation8 + $0x2c0] sm:$0xf]  ;;  %v3859_v52 = vld [vmem:[#allocation8 + $0x2cc] sm:$0xf0]  ;;  %v2940_v53 = vor.u32 %v3827_v46, %v2939_v45 }
  0x3b   :  { %357 = vmatpush.bf16.msra.mxu2 %v2612_v19  ;;  %370 = vmatpush.bf16.msra.mxu3 %v2616_v23  ;;  %v3791_v54 = vld [vmem:[#allocation8 + $0xac] sm:$0xf0]  ;;  %v3195_v55 = vld [vmem:[#allocation8 + $0x3c0] sm:$0xf]  ;;  %v3068_v59 = vor.u32 %v3859_v52, %v3067_v51 }
  0x3c   :  { %v3891_v56 = vld [vmem:[#allocation8 + $0x3cc] sm:$0xf0]  ;;  %v2923_v57 = vld [vmem:[#allocation8 + $0x1a0] sm:$0xf]  ;;  %v2796_v60 = vor.u32 %v3791_v54, %v2795_v50 }
  0x3d   :  { %332 = vmatpush.bf16.msra.mxu0 %v2588_v30  ;;  %v3823_v58 = vld [vmem:[#allocation8 + $0x1ac] sm:$0xf0]  ;;  %v3196_v61 = vor.u32 %v3891_v56, %v3195_v55  ;;  %v2779_v62 = vld [vmem:[#allocation8 + $0x80] sm:$0xf]  ;;  %v3797_v55 = vld [vmem:[#allocation8 + $0xe4] sm:$0xf] }
  0x3e   :  { %345 = vmatpush.bf16.msra.mxu1 %v2592_v33  ;;  %v3051_v63 = vld [vmem:[#allocation8 + $0x2a0] sm:$0xf]  ;;  %v3855_v0 = vld [vmem:[#allocation8 + $0x2ac] sm:$0xf0]  ;;  %v2924_v1 = vor.u32 %v3823_v58, %v2923_v57  ;;  %v2829_v56 = vld [vmem:[#allocation8 + $0xf0] sm:$0xf0] }
  0x3f   :  { %358 = vmatpush.bf16.msra.mxu2 %v2596_v34  ;;  %371 = vmatpush.bf16.msra.mxu3 %v2600_v35  ;;  %v3787_v2 = vld [vmem:[#allocation8 + $0x8c] sm:$0xf0]  ;;  %v3179_v3 = vld [vmem:[#allocation8 + $0x3a0] sm:$0xf]  ;;  %v3052_v7 = vor.u32 %v3855_v0, %v3051_v63  ;;  %v3829_v57 = vld [vmem:[#allocation8 + $0x1e4] sm:$0xf] }
  0x40   :  { %333 = vmatmul.bf16.vlgmr.msra.gmra.mxu0 %v132_v44  ;;  %v3887_v4 = vld [vmem:[#allocation8 + $0x3ac] sm:$0xf0]  ;;  %v2907_v5 = vld [vmem:[#allocation8 + $0x180] sm:$0xf]  ;;  %v2780_v8 = vor.u32 %v3787_v2, %v2779_v62  ;;  %v2957_v58 = vld [vmem:[#allocation8 + $0x1f0] sm:$0xf0] }
  0x41   :  { %1202 = vmatpush.bf16.msrb.mxu0 %v2828_v36  ;;  %346 = vmatmul.bf16.vlgmr.msra.gmra.mxu1 %v132_v44  ;;  %v3819_v6 = vld [vmem:[#allocation8 + $0x18c] sm:$0xf0]  ;;  %v3180_v9 = vor.u32 %v3887_v4, %v3179_v3  ;;  %v2763_v10 = vld [vmem:[#allocation8 + $0x60] sm:$0xf]  ;;  %v3793_v62 = vld [vmem:[#allocation8 + $0xc4] sm:$0xf]  ;;  %v2832_v3 = vor.u32 %v3797_v55, %v2829_v56 }
  0x42   :  { %1215 = vmatpush.bf16.msrb.mxu1 %v2956_v40  ;;  %359 = vmatmul.bf16.vlgmr.msra.gmra.mxu2 %v132_v44  ;;  %v3035_v11 = vld [vmem:[#allocation8 + $0x280] sm:$0xf]  ;;  %v3851_v12 = vld [vmem:[#allocation8 + $0x28c] sm:$0xf0]  ;;  %v2908_v13 = vor.u32 %v3819_v6, %v2907_v5  ;;  %v3861_v5 = vld [vmem:[#allocation8 + $0x2e4] sm:$0xf] }
  0x43   :  { %372 = vmatmul.bf16.vlgmr.msra.gmra.mxu3 %v132_v44  ;;  %1228 = vmatpush.bf16.msrb.mxu2 %v3084_v47  ;;  %v3783_v14 = vld [vmem:[#allocation8 + $0x6c] sm:$0xf0]  ;;  %v3163_v15 = vld [vmem:[#allocation8 + $0x380] sm:$0xf]  ;;  %v3036_v19 = vor.u32 %v3851_v12, %v3035_v11  ;;  %v3085_v6 = vld [vmem:[#allocation8 + $0x2f0] sm:$0xf0] }
  0x44   :  { %1241 = vmatpush.bf16.msrb.mxu3 %v3212_v49  ;;  %v3883_v16 = vld [vmem:[#allocation8 + $0x38c] sm:$0xf0]  ;;  %v2891_v17 = vld [vmem:[#allocation8 + $0x160] sm:$0xf]  ;;  %v2764_v20 = vor.u32 %v3783_v14, %v2763_v10  ;;  %v3213_v10 = vld [vmem:[#allocation8 + $0x3f0] sm:$0xf0] }
  0x45   :  { %1203 = vmatpush.bf16.msrb.mxu0 %v2812_v48  ;;  %v3815_v18 = vld [vmem:[#allocation8 + $0x16c] sm:$0xf0]  ;;  %v3164_v21 = vor.u32 %v3883_v16, %v3163_v15  ;;  %v2747_v22 = vld [vmem:[#allocation8 + $0x40] sm:$0xf]  ;;  %v3825_v11 = vld [vmem:[#allocation8 + $0x1c4] sm:$0xf]  ;;  %v3088_v15 = vor.u32 %v3861_v5, %v3085_v6 }
  0x46   :  { %1216 = vmatpush.bf16.msrb.mxu1 %v2940_v53  ;;  %v3019_v23 = vld [vmem:[#allocation8 + $0x260] sm:$0xf]  ;;  %v3847_v24 = vld [vmem:[#allocation8 + $0x26c] sm:$0xf0]  ;;  %v2892_v25 = vor.u32 %v3815_v18, %v2891_v17  ;;  %v2941_v12 = vld [vmem:[#allocation8 + $0x1d0] sm:$0xf0] }
  0x47   :  { %1229 = vmatpush.bf16.msrb.mxu2 %v3068_v59  ;;  %v3779_v26 = vld [vmem:[#allocation8 + $0x4c] sm:$0xf0]  ;;  %v3147_v27 = vld [vmem:[#allocation8 + $0x360] sm:$0xf]  ;;  %v3020_v31 = vor.u32 %v3847_v24, %v3019_v23  ;;  %v3789_v18 = vld [vmem:[#allocation8 + $0xa4] sm:$0xf] }
  0x48   :  { %1242 = vmatpush.bf16.msrb.mxu3 %v3196_v61  ;;  %v3879_v28 = vld [vmem:[#allocation8 + $0x36c] sm:$0xf0]  ;;  %v2875_v29 = vld [vmem:[#allocation8 + $0x140] sm:$0xf]  ;;  %v2748_v32 = vor.u32 %v3779_v26, %v2747_v22  ;;  %v2797_v22 = vld [vmem:[#allocation8 + $0xb0] sm:$0xf0] }
  0x49   :  { %1204 = vmatpush.bf16.msrb.mxu0 %v2796_v60  ;;  %v3811_v30 = vld [vmem:[#allocation8 + $0x14c] sm:$0xf0]  ;;  %v3148_v33 = vor.u32 %v3879_v28, %v3147_v27  ;;  %v2731_v34 = vld [vmem:[#allocation8 + $0x20] sm:$0xf]  ;;  %v3889_v23 = vld [vmem:[#allocation8 + $0x3c4] sm:$0xf]  ;;  %v2800_v28 = vor.u32 %v3789_v18, %v2797_v22 }
  0x4a   :  { %1217 = vmatpush.bf16.msrb.mxu1 %v2924_v1  ;;  %v3003_v35 = vld [vmem:[#allocation8 + $0x240] sm:$0xf]  ;;  %v3843_v36 = vld [vmem:[#allocation8 + $0x24c] sm:$0xf0]  ;;  %v2876_v37 = vor.u32 %v3811_v30, %v2875_v29  ;;  %v3197_v24 = vld [vmem:[#allocation8 + $0x3d0] sm:$0xf0] }
  0x4b   :  { %1230 = vmatpush.bf16.msrb.mxu2 %v3052_v7  ;;  %v3775_v38 = vld [vmem:[#allocation8 + $0x2c] sm:$0xf0]  ;;  %v3131_v39 = vld [vmem:[#allocation8 + $0x340] sm:$0xf]  ;;  %v3004_v43 = vor.u32 %v3843_v36, %v3003_v35  ;;  %v2960_v7 = vor.u32 %v3829_v57, %v2957_v58  ;;  %v2925_v26 = vld [vmem:[#allocation8 + $0x1b0] sm:$0xf0]  ;;  %v3200_v29 = vor.u32 %v3889_v23, %v3197_v24 }
  0x4c   :  { %1243 = vmatpush.bf16.msrb.mxu3 %v3180_v9  ;;  %v3875_v40 = vld [vmem:[#allocation8 + $0x34c] sm:$0xf0]  ;;  %v2859_v41 = vld [vmem:[#allocation8 + $0x120] sm:$0xf]  ;;  %v2732_v45 = vor.u32 %v3775_v38, %v2731_v34  ;;  %v3893_v9 = vld [vmem:[#allocation8 + $0x3e4] sm:$0xf] }
  0x4d   :  { %1205 = vmatpush.bf16.msrb.mxu0 %v2780_v8  ;;  %v3807_v42 = vld [vmem:[#allocation8 + $0x12c] sm:$0xf0]  ;;  %v2715_v44 = vld [vmem:[#allocation8] sm:$0xf]  ;;  %v3132_v46 = vor.u32 %v3875_v40, %v3131_v39  ;;  %v2813_v8 = vld [vmem:[#allocation8 + $0xd0] sm:$0xf0]  ;;  %v3216_v17 = vor.u32 %v3893_v9, %v3213_v10 }
  0x4e   :  { %1218 = vmatpush.bf16.msrb.mxu1 %v2908_v13  ;;  %v3771_v47 = vld [vmem:[#allocation8 + $0xc] sm:$0xf0]  ;;  %v2987_v48 = vld [vmem:[#allocation8 + $0x220] sm:$0xf]  ;;  %v2860_v50 = vor.u32 %v3807_v42, %v2859_v41  ;;  %v2816_v16 = vor.u32 %v3793_v62, %v2813_v8  ;;  %v3817_v34 = vld [vmem:[#allocation8 + $0x184] sm:$0xf] }
  0x4f   :  { %1231 = vmatpush.bf16.msrb.mxu2 %v3036_v19  ;;  %v3839_v49 = vld [vmem:[#allocation8 + $0x22c] sm:$0xf0]  ;;  %v2843_v51 = vld [vmem:[#allocation8 + $0x100] sm:$0xf]  ;;  %v2716_v60 = vor.u32 %v3771_v47, %v2715_v44  ;;  %v3857_v19 = vld [vmem:[#allocation8 + $0x2c4] sm:$0xf] }
  0x50   :  { %1244 = vmatpush.bf16.msrb.mxu3 %v3164_v21  ;;  %v3115_v52 = vld [vmem:[#allocation8 + $0x320] sm:$0xf]  ;;  %v3871_v53 = vld [vmem:[#allocation8 + $0x32c] sm:$0xf0]  ;;  %v2988_v59 = vor.u32 %v3839_v49, %v2987_v48  ;;  %v2944_v21 = vor.u32 %v3825_v11, %v2941_v12  ;;  %v2909_v36 = vld [vmem:[#allocation8 + $0x190] sm:$0xf0] }
  0x51   :  { %1206 = vmatpush.bf16.msrb.mxu0 %v2764_v20  ;;  %v3803_v54 = vld [vmem:[#allocation8 + $0x10c] sm:$0xf0]  ;;  %v3116_v61 = vor.u32 %v3871_v53, %v3115_v52  ;;  %v2971_v63 = vld [vmem:[#allocation8 + $0x200] sm:$0xf]  ;;  %v3069_v20 = vld [vmem:[#allocation8 + $0x2d0] sm:$0xf0] }
  0x52   :  { %1219 = vmatpush.bf16.msrb.mxu1 %v2892_v25  ;;  %v3835_v0 = vld [vmem:[#allocation8 + $0x20c] sm:$0xf0]  ;;  %v3099_v1 = vld [vmem:[#allocation8 + $0x300] sm:$0xf]  ;;  %v2844_v2 = vor.u32 %v3803_v54, %v2843_v51  ;;  %v3821_v25 = vld [vmem:[#allocation8 + $0x1a4] sm:$0xf]  ;;  %v3072_v27 = vor.u32 %v3857_v19, %v3069_v20 }
  0x53   :  { %1232 = vmatpush.bf16.msrb.mxu2 %v3020_v31  ;;  %v3867_v4 = vld [vmem:[#allocation8 + $0x30c] sm:$0xf0]  ;;  %v2972_v13 = vor.u32 %v3835_v0, %v2971_v63  ;;  %v2928_v30 = vor.u32 %v3821_v25, %v2925_v26  ;;  %v379_v31 = vld [vmem:[#allocation7] sm:$0xf]  ;;  %v3853_v38 = vld [vmem:[#allocation8 + $0x2a4] sm:$0xf] }
  0x54   :  { %1245 = vmatpush.bf16.msrb.mxu3 %v3148_v33  ;;  %v3100_v14 = vor.u32 %v3867_v4, %v3099_v1  ;;  %381 = vst [vmem:[#allocation1] ss:$9 sm:$0xff] %v379_v31  ;;  %v2781_v33 = vld [vmem:[#allocation8 + $0x90] sm:$0xf0]  ;;  %v3885_v40 = vld [vmem:[#allocation8 + $0x3a4] sm:$0xf] }
  0x55   :  { %1207 = vmatpush.bf16.msrb.mxu0 %v2748_v32  ;;  %v3785_v32 = vld [vmem:[#allocation8 + $0x84] sm:$0xf]  ;;  %v3053_v39 = vld [vmem:[#allocation8 + $0x2b0] sm:$0xf0]  ;;  %v1412_v25 = vld [vmem:[#allocation10] sm:$0xf] }
  0x56   :  { %1220 = vmatpush.bf16.msrb.mxu1 %v2876_v37  ;;  %v2784_v35 = vor.u32 %v3785_v32, %v2781_v33  ;;  %v2912_v37 = vor.u32 %v3817_v34, %v2909_v36  ;;  %v3056_v41 = vor.u32 %v3853_v38, %v3053_v39  ;;  %v3181_v42 = vld [vmem:[#allocation8 + $0x3b0] sm:$0xf0]  ;;  %v3781_v44 = vld [vmem:[#allocation8 + $0x64] sm:$0xf] }
  0x57   :  { %1233 = vmatpush.bf16.msrb.mxu2 %v3004_v43  ;;  %v3184_v43 = vor.u32 %v3885_v40, %v3181_v42  ;;  %v3813_v47 = vld [vmem:[#allocation8 + $0x164] sm:$0xf]  ;;  %v2893_v48 = vld [vmem:[#allocation8 + $0x170] sm:$0xf0] }
  0x58   :  { %1246 = vmatpush.bf16.msrb.mxu3 %v3132_v46  ;;  %v2896_v49 = vor.u32 %v3813_v47, %v2893_v48  ;;  %v3037_v51 = vld [vmem:[#allocation8 + $0x290] sm:$0xf0]  ;;  %v3881_v52 = vld [vmem:[#allocation8 + $0x384] sm:$0xf] }
  0x59   :  { %1208 = vmatpush.bf16.msrb.mxu0 %v2732_v45  ;;  %v2765_v45 = vld [vmem:[#allocation8 + $0x70] sm:$0xf0]  ;;  %v3777_v56 = vld [vmem:[#allocation8 + $0x44] sm:$0xf] }
  0x5a   :  { %1221 = vmatpush.bf16.msrb.mxu1 %v2860_v50  ;;  %v2768_v46 = vor.u32 %v3781_v44, %v2765_v45  ;;  %v3849_v50 = vld [vmem:[#allocation8 + $0x284] sm:$0xf]  ;;  %v3165_v54 = vld [vmem:[#allocation8 + $0x390] sm:$0xf0] }
  0x5b   :  { %1234 = vmatpush.bf16.msrb.mxu2 %v2988_v59  ;;  %v3040_v53 = vor.u32 %v3849_v50, %v3037_v51  ;;  %v3168_v55 = vor.u32 %v3881_v52, %v3165_v54  ;;  %v2749_v57 = vld [vmem:[#allocation8 + $0x50] sm:$0xf0]  ;;  %v3809_v58 = vld [vmem:[#allocation8 + $0x144] sm:$0xf]  ;;  %v383_v20 = vld [vmem:[#allocation1 + $0x9] sm:$0xff] }
  0x5c   :  { %1247 = vmatpush.bf16.msrb.mxu3 %v3116_v61  ;;  %v2752_v59 = vor.u32 %v3777_v56, %v2749_v57  ;;  %v3845_v62 = vld [vmem:[#allocation8 + $0x264] sm:$0xf]  ;;  %v3021_v63 = vld [vmem:[#allocation8 + $0x270] sm:$0xf0]  ;;  %v385_v24 = vld [vmem:[#allocation1 + $0x1b] sm:$0xff]  ;;  %v389_v40 = vpack.i.b16 %v383_v20, %v383_v20 }
  0x5d   :  { %1209 = vmatpush.bf16.msrb.mxu0 %v2716_v60  ;;  %v2877_v60 = vld [vmem:[#allocation8 + $0x150] sm:$0xf0]  ;;  %v3024_v0 = vor.u32 %v3845_v62, %v3021_v63  ;;  %v3877_v1 = vld [vmem:[#allocation8 + $0x364] sm:$0xf] }
  0x5e   :  { %1222 = vmatpush.bf16.msrb.mxu1 %v2844_v2  ;;  %v2880_v61 = vor.u32 %v3809_v58, %v2877_v60  ;;  %v3149_v2 = vld [vmem:[#allocation8 + $0x370] sm:$0xf0]  ;;  %v3773_v4 = vld [vmem:[#allocation8 + $0x24] sm:$0xf]  ;;  %v391_v42 = vperm.slane %v389_v40, 0 }
  0x5f   :  { %1235 = vmatpush.bf16.msrb.mxu2 %v2972_v13  ;;  %v2733_v5 = vld [vmem:[#allocation8 + $0x30] sm:$0xf0]  ;;  %v3805_v6 = vld [vmem:[#allocation8 + $0x124] sm:$0xf] }
  0x60   :  { %1248 = vmatpush.bf16.msrb.mxu3 %v3100_v14  ;;  %v2861_v8 = vld [vmem:[#allocation8 + $0x130] sm:$0xf0]  ;;  %v3841_v10 = vld [vmem:[#allocation8 + $0x244] sm:$0xf] }
  0x61   :  { %1254 = vmatpush.bf16.msra.mxu0 %v2832_v3  ;;  %v3152_v3 = vor.u32 %v3877_v1, %v3149_v2  ;;  %v2864_v9 = vor.u32 %v3805_v6, %v2861_v8  ;;  %v3005_v11 = vld [vmem:[#allocation8 + $0x250] sm:$0xf0]  ;;  %v3873_v12 = vld [vmem:[#allocation8 + $0x344] sm:$0xf]  ;;  %v2963_v8 = vld [vmem:[#allocation8 + $0x1e8] sm:$0xf] }
  0x62   :  { %1267 = vmatpush.bf16.msra.mxu1 %v2960_v7  ;;  %v2736_v7 = vor.u32 %v3773_v4, %v2733_v5  ;;  %v3008_v13 = vor.u32 %v3841_v10, %v3005_v11  ;;  %v3133_v14 = vld [vmem:[#allocation8 + $0x350] sm:$0xf0]  ;;  %v3801_v18 = vld [vmem:[#allocation8 + $0x104] sm:$0xf]  ;;  %v2835_v4 = vld [vmem:[#allocation8 + $0xe8] sm:$0xf] }
  0x63   :  { %1280 = vmatpush.bf16.msra.mxu2 %v3088_v15  ;;  %v3136_v15 = vor.u32 %v3873_v12, %v3133_v14  ;;  %v382_v19 = vld [vmem:[#allocation1] sm:$0xff]  ;;  %v384_v23 = vld [vmem:[#allocation1 + $0x12] sm:$0xff]  ;;  %v3800_v5 = vld [vmem:[#allocation8 + $0xf4] sm:$0xf0] }
  0x64   :  { %1293 = vmatpush.bf16.msra.mxu3 %v3216_v17  ;;  %v2717_v17 = vld [vmem:[#allocation8 + $0x10] sm:$0xf0]  ;;  %1414 = vst [vmem:[#allocation1] ss:$9 sm:$0xff] %v1412_v25  ;;  %v3833_v33 = vld [vmem:[#allocation8 + $0x204] sm:$0xf]  ;;  %v386_v39 = vpack.i.b16 %v382_v19, %v382_v19  ;;  %v392_v45 = vpack.i.b16 %v384_v23, %v384_v23 }
  0x65   :  { %1255 = vmatpush.bf16.msra.mxu0 %v2816_v16  ;;  %v3769_v16 = vld [vmem:[#allocation8 + $0x4] sm:$0xf]  ;;  %v2845_v22 = vld [vmem:[#allocation8 + $0x110] sm:$0xf0]  ;;  %v2947_v23 = vld [vmem:[#allocation8 + $0x1c8] sm:$0xf] }
  0x66   :  { %1268 = vmatpush.bf16.msra.mxu1 %v2944_v21  ;;  %v2720_v21 = vor.u32 %v3769_v16, %v2717_v17  ;;  %v2848_v26 = vor.u32 %v3801_v18, %v2845_v22  ;;  %v3117_v31 = vld [vmem:[#allocation8 + $0x330] sm:$0xf0]  ;;  %v394_v52 = vperm.slane %v392_v45, 0  ;;  %v2836_v16 = vor.u32 %v3800_v5, %v2835_v4  ;;  %v2819_v18 = vld [vmem:[#allocation8 + $0xc8] sm:$0xf] }
  0x67   :  { %1281 = vmatpush.bf16.msra.mxu2 %v3072_v27  ;;  %v3837_v27 = vld [vmem:[#allocation8 + $0x224] sm:$0xf]  ;;  %v2973_v34 = vld [vmem:[#allocation8 + $0x210] sm:$0xf0]  ;;  %v3796_v22 = vld [vmem:[#allocation8 + $0xd4] sm:$0xf0] }
  0x68   :  { %1294 = vmatpush.bf16.msra.mxu3 %v3200_v29  ;;  %v2976_v36 = vor.u32 %v3833_v33, %v2973_v34  ;;  %v3860_v45 = vld [vmem:[#allocation8 + $0x2d4] sm:$0xf0]  ;;  %v3043_v5 = vld [vmem:[#allocation8 + $0x288] sm:$0xf] }
  0x69   :  { %1256 = vmatpush.bf16.msra.mxu0 %v2800_v28  ;;  %v2989_v28 = vld [vmem:[#allocation8 + $0x230] sm:$0xf0] }
  0x6a   :  { %1269 = vmatpush.bf16.msra.mxu1 %v2928_v30  ;;  %v2992_v29 = vor.u32 %v3837_v27, %v2989_v28  ;;  %v3869_v30 = vld [vmem:[#allocation8 + $0x324] sm:$0xf]  ;;  %v3091_v27 = vld [vmem:[#allocation8 + $0x2e8] sm:$0xf]  ;;  %v3864_v28 = vld [vmem:[#allocation8 + $0x2f4] sm:$0xf0] }
  0x6b   :  { %1282 = vmatpush.bf16.msra.mxu2 %v3056_v41  ;;  %v3120_v32 = vor.u32 %v3869_v30, %v3117_v31  ;;  %v388_v41 = vperm.slane %v386_v39, 0  ;;  %v3896_v30 = vld [vmem:[#allocation8 + $0x3f4] sm:$0xf0]  ;;  %v2820_v31 = vor.u32 %v3796_v22, %v2819_v18 }
  0x6c   :  { %1295 = vmatpush.bf16.msra.mxu3 %v3184_v43  ;;  %v3848_v18 = vld [vmem:[#allocation8 + $0x274] sm:$0xf0] }
  0x6d   :  { %1257 = vmatpush.bf16.msra.mxu0 %v2784_v35  ;;  %v3865_v35 = vld [vmem:[#allocation8 + $0x304] sm:$0xf]  ;;  %v402_v48 = vunpack.c.l.bf16 %v388_v41  ;;  %v3092_v41 = vor.u32 %v3864_v28, %v3091_v27  ;;  %v3880_v22 = vld [vmem:[#allocation8 + $0x374] sm:$0xf0]  ;;  %v2867_v27 = vld [vmem:[#allocation8 + $0x128] sm:$0xf] }
  0x6e   :  { %1270 = vmatpush.bf16.msra.mxu1 %v2912_v37  ;;  %v3101_v37 = vld [vmem:[#allocation8 + $0x310] sm:$0xf0]  ;;  %v3808_v28 = vld [vmem:[#allocation8 + $0x134] sm:$0xf0] }
  0x6f   :  { %1283 = vmatpush.bf16.msra.mxu2 %v3040_v53  ;;  %v3104_v38 = vor.u32 %v3865_v35, %v3101_v37  ;;  %v2803_v35 = vld [vmem:[#allocation8 + $0xa8] sm:$0xf] }
  0x70   :  { %1296 = vmatpush.bf16.msra.mxu3 %v3168_v55  ;;  %v2931_v37 = vld [vmem:[#allocation8 + $0x1a8] sm:$0xf] }
  0x71   :  { %1258 = vmatpush.bf16.msra.mxu0 %v2768_v46  ;;  %v395_v46 = vpack.i.b16 %v385_v24, %v385_v24  ;;  %v3828_v24 = vld [vmem:[#allocation8 + $0x1d4] sm:$0xf0] }
  0x72   :  { %1271 = vmatpush.bf16.msra.mxu1 %v2896_v49  ;;  %v403_v49 = vunpack.c.l.bf16 %v391_v42 }
  0x73   :  { %1284 = vmatpush.bf16.msra.mxu2 %v3024_v0  ;;  %v397_v53 = vperm.slane %v395_v46, 0 }
  0x74   :  { %1297 = vmatpush.bf16.msra.mxu3 %v3152_v3 }
  0x75   :  { %1259 = vmatpush.bf16.msra.mxu0 %v2752_v59  ;;  %v405_v62 = vunpack.c.l.bf16 %v397_v53  ;;  %v2915_v53 = vld [vmem:[#allocation8 + $0x188] sm:$0xf] }
  0x76   :  { %1272 = vmatpush.bf16.msra.mxu1 %v2880_v61  ;;  %v404_v61 = vunpack.c.l.bf16 %v394_v52  ;;  %v3788_v52 = vld [vmem:[#allocation8 + $0x94] sm:$0xf0] }
  0x77   :  { %1285 = vmatpush.bf16.msra.mxu2 %v3008_v13 }
  0x78   :  { %1298 = vmatpush.bf16.msra.mxu3 %v3136_v15 }
  0x79   :  { %1260 = vmatpush.bf16.msra.mxu0 %v2736_v7 }
  0x7a   :  { %1273 = vmatpush.bf16.msra.mxu1 %v2864_v9  ;;  %v3832_v9 = vld [vmem:[#allocation8 + $0x1f4] sm:$0xf0] }
  0x7b   :  { %1286 = vmatpush.bf16.msra.mxu2 %v2992_v29  ;;  %v2964_v17 = vor.u32 %v3832_v9, %v2963_v8  ;;  %v3219_v29 = vld [vmem:[#allocation8 + $0x3e8] sm:$0xf]  ;;  %v3884_v8 = vld [vmem:[#allocation8 + $0x394] sm:$0xf0] }
  0x7c   :  { %1299 = vmatpush.bf16.msra.mxu3 %v3120_v32  ;;  %v2948_v32 = vor.u32 %v3828_v24, %v2947_v23  ;;  %v3220_v42 = vor.u32 %v3896_v30, %v3219_v29 }
  0x7d   :  { %1261 = vmatpush.bf16.msra.mxu0 %v2720_v21 }
  0x7e   :  { %1274 = vmatpush.bf16.msra.mxu1 %v2848_v26 }
  0x7f   :  { %1287 = vmatpush.bf16.msra.mxu2 %v2976_v36  ;;  %v3792_v36 = vld [vmem:[#allocation8 + $0xb4] sm:$0xf0] }
  0x80   :  { %1300 = vmatpush.bf16.msra.mxu3 %v3104_v38  ;;  %v3824_v38 = vld [vmem:[#allocation8 + $0x1b4] sm:$0xf0] }
  0xbd   :  { %v334_v43 = vpop.f32.mrf.mxu0 }
  0xbe   :  { %v347_v44 = vpop.f32.mrf.mxu1 }
  0xbf   :  { %v377_v47 = vpack.c.bf16 %v347_v44, %v334_v43  ;;  %v2804_v43 = vor.u32 %v3792_v36, %v2803_v35  ;;  %v3075_v44 = vld [vmem:[#allocation8 + $0x2c8] sm:$0xf]  ;;  %v2868_v36 = vor.u32 %v3808_v28, %v2867_v27  ;;  %v3818_v27 = vld [vmem:[#allocation8 + $0x18c] sm:$0xf]  ;;  %v2917_v28 = vld [vmem:[#allocation8 + $0x198] sm:$0xf0] }
  0xc1   :  { %v398_v50 = vunpack.c.l.bf16 %v377_v47  ;;  %v399_v51 = vunpack.c.h.bf16 %v377_v47 }
  0xc3   :  { %v406_v54 = vadd.f32 %v402_v48, %v398_v50  ;;  %v407_v55 = vadd.f32 %v403_v49, %v399_v51  ;;  %v2932_v48 = vor.u32 %v3824_v38, %v2931_v37  ;;  %v3203_v49 = vld [vmem:[#allocation8 + $0x3c8] sm:$0xf]  ;;  %v3892_v50 = vld [vmem:[#allocation8 + $0x3d4] sm:$0xf0] }
  0xc4   :  { %v2787_v51 = vld [vmem:[#allocation8 + $0x88] sm:$0xf]  ;;  %v3772_v38 = vld [vmem:[#allocation8 + $0x14] sm:$0xf0] }
  0xc5   :  { %v360_v56 = vpop.f32.mrf.mxu2  ;;  %v410_v57 = vpack.c.bf16 %v407_v55, %v406_v54  ;;  %v336_v59 = vpop.f32.mrf.mxu0  ;;  %v3820_v54 = vld [vmem:[#allocation8 + $0x194] sm:$0xf0]  ;;  %v3076_v55 = vor.u32 %v3860_v45, %v3075_v44  ;;  %v2723_v37 = vld [vmem:[#allocation8 + $0x8] sm:$0xf]  ;;  %v3830_v45 = vld [vmem:[#allocation8 + $0x1ec] sm:$0xf] }
  0xc6   :  { %v373_v58 = vpop.f32.mrf.mxu3  ;;  %v349_v63 = vpop.f32.mrf.mxu1  ;;  %v2916_v59 = vor.u32 %v3820_v54, %v2915_v53  ;;  %v2724_v53 = vor.u32 %v3772_v38, %v2723_v37  ;;  %v3782_v37 = vld [vmem:[#allocation8 + $0x6c] sm:$0xf]  ;;  %v2773_v38 = vld [vmem:[#allocation8 + $0x78] sm:$0xf0] }
  0xc7   :  { %v378_v60 = vpack.c.bf16 %v373_v58, %v360_v56  ;;  %v412_v0 = vunpack.c.l.bf16 %v410_v57  ;;  %v413_v1 = vunpack.c.h.bf16 %v410_v57  ;;  %v3204_v56 = vor.u32 %v3892_v50, %v3203_v49  ;;  %v3059_v57 = vld [vmem:[#allocation8 + $0x2a8] sm:$0xf]  ;;  %v3840_v50 = vld [vmem:[#allocation8 + $0x234] sm:$0xf0] }
  0xc8   :  { %v2788_v58 = vor.u32 %v3788_v52, %v2787_v51  ;;  %v2771_v63 = vld [vmem:[#allocation8 + $0x68] sm:$0xf]  ;;  %v3872_v52 = vld [vmem:[#allocation8 + $0x334] sm:$0xf0] }
  0xc9   :  { %v400_v2 = vunpack.c.l.bf16 %v378_v60  ;;  %v401_v3 = vunpack.c.h.bf16 %v378_v60  ;;  %v416_v6 = vmul.f32 0.20019531, %v412_v0  ;;  %v417_v7 = vmul.f32 0.20019531, %v413_v1  ;;  %v3856_v60 = vld [vmem:[#allocation8 + $0x2b4] sm:$0xf0]  ;;  %v2995_v49 = vld [vmem:[#allocation8 + $0x228] sm:$0xf] }
  0xca   :  { %v3123_v51 = vld [vmem:[#allocation8 + $0x328] sm:$0xf] }
  0xcb   :  { %v408_v10 = vadd.f32 %v404_v61, %v400_v2  ;;  %v409_v11 = vadd.f32 %v405_v62, %v401_v3  ;;  %v426_v12 = vmax.f32 %v412_v0, %v416_v6  ;;  %v427_v13 = vmax.f32 %v413_v1, %v417_v7  ;;  %v3187_v61 = vld [vmem:[#allocation8 + $0x3a8] sm:$0xf]  ;;  %v3888_v62 = vld [vmem:[#allocation8 + $0x3b4] sm:$0xf0] }
  0xcc   :  { %v3784_v0 = vld [vmem:[#allocation8 + $0x74] sm:$0xf0]  ;;  %v2899_v1 = vld [vmem:[#allocation8 + $0x168] sm:$0xf]  ;;  %v3060_v3 = vor.u32 %v3856_v60, %v3059_v57  ;;  %v3188_v4 = vor.u32 %v3888_v62, %v3187_v61  ;;  %v3794_v57 = vld [vmem:[#allocation8 + $0xcc] sm:$0xf]  ;;  %v2996_v60 = vor.u32 %v3840_v50, %v2995_v49  ;;  %v3124_v61 = vor.u32 %v3872_v52, %v3123_v51 }
  0xcd   :  { %v411_v14 = vpack.c.bf16 %v409_v11, %v408_v10  ;;  %v362_v15 = vpop.f32.mrf.mxu2  ;;  %v4313_v20 = vpack.c.bf16 %v426_v12, %v426_v12  ;;  %v4315_v21 = vpack.c.bf16 %v427_v13, %v427_v13  ;;  %v3816_v2 = vld [vmem:[#allocation8 + $0x174] sm:$0xf0]  ;;  %v3171_v7 = vld [vmem:[#allocation8 + $0x388] sm:$0xf]  ;;  %v2772_v9 = vor.u32 %v3784_v0, %v2771_v63  ;;  %v2949_v62 = vld [vmem:[#allocation8 + $0x1d8] sm:$0xf0] }
  0xce   :  { %v375_v19 = vpop.f32.mrf.mxu3  ;;  %v3852_v6 = vld [vmem:[#allocation8 + $0x294] sm:$0xf0]  ;;  %v2900_v10 = vor.u32 %v3816_v2, %v2899_v1  ;;  %v2755_v11 = vld [vmem:[#allocation8 + $0x48] sm:$0xf]  ;;  %v2776_v49 = vor.u32 %v3782_v37, %v2773_v38  ;;  %v3778_v51 = vld [vmem:[#allocation8 + $0x4c] sm:$0xf] }
  0xcf   :  { %v414_v25 = vunpack.c.l.bf16 %v411_v14  ;;  %v415_v26 = vunpack.c.h.bf16 %v411_v14  ;;  %1210 = vmatmul.bf16.vlgmr.msrb.gmra.mxu0 %v4313_v20  ;;  %1223 = vmatmul.bf16.vlgmr.msrb.gmra.mxu1 %v4315_v21  ;;  %v3780_v12 = vld [vmem:[#allocation8 + $0x54] sm:$0xf0]  ;;  %v2883_v13 = vld [vmem:[#allocation8 + $0x148] sm:$0xf]  ;;  %v3044_v15 = vor.u32 %v3852_v6, %v3043_v5  ;;  %v3894_v5 = vld [vmem:[#allocation8 + $0x3ec] sm:$0xf] }
  0xd0   :  { %1306 = vmatpush.bf16.msrb.mxu0 %v2836_v16  ;;  %1319 = vmatpush.bf16.msrb.mxu1 %v2964_v17  ;;  %v3812_v14 = vld [vmem:[#allocation8 + $0x154] sm:$0xf0]  ;;  %v3172_v16 = vor.u32 %v3884_v8, %v3171_v7  ;;  %v3027_v17 = vld [vmem:[#allocation8 + $0x268] sm:$0xf]  ;;  %v2756_v23 = vor.u32 %v3780_v12, %v2755_v11  ;;  %v3221_v6 = vld [vmem:[#allocation8 + $0x3f8] sm:$0xf0] }
  0xd1   :  { %v418_v33 = vmul.f32 0.20019531, %v414_v25  ;;  %v419_v34 = vmul.f32 0.20019531, %v415_v26  ;;  %v3155_v19 = vld [vmem:[#allocation8 + $0x368] sm:$0xf]  ;;  %v2884_v24 = vor.u32 %v3812_v14, %v2883_v13  ;;  %v3028_v29 = vor.u32 %v3848_v18, %v3027_v17  ;;  %v3836_v0 = vld [vmem:[#allocation8 + $0x214] sm:$0xf0] }
  0xd2   :  { %v3156_v30 = vor.u32 %v3880_v22, %v3155_v19  ;;  %v2979_v63 = vld [vmem:[#allocation8 + $0x208] sm:$0xf]  ;;  %v3868_v2 = vld [vmem:[#allocation8 + $0x314] sm:$0xf0]  ;;  %v2805_v12 = vld [vmem:[#allocation8 + $0xb8] sm:$0xf0] }
  0xd3   :  { %v428_v39 = vmax.f32 %v414_v25, %v418_v33  ;;  %v429_v40 = vmax.f32 %v415_v26, %v419_v34  ;;  %v2739_v25 = vld [vmem:[#allocation8 + $0x28] sm:$0xf]  ;;  %v3776_v26 = vld [vmem:[#allocation8 + $0x34] sm:$0xf0]  ;;  %v3822_v13 = vld [vmem:[#allocation8 + $0x1ac] sm:$0xf] }
  0xd4   :  { %1307 = vmatpush.bf16.msrb.mxu0 %v2820_v31  ;;  %1320 = vmatpush.bf16.msrb.mxu1 %v2948_v32  ;;  %v3011_v31 = vld [vmem:[#allocation8 + $0x248] sm:$0xf]  ;;  %v3844_v32 = vld [vmem:[#allocation8 + $0x254] sm:$0xf0]  ;;  %v2740_v35 = vor.u32 %v3776_v26, %v2739_v25  ;;  %v2933_v14 = vld [vmem:[#allocation8 + $0x1b8] sm:$0xf0] }
  0xd5   :  { %v4319_v46 = vpack.c.bf16 %v428_v39, %v428_v39  ;;  %v4321_v47 = vpack.c.bf16 %v429_v40, %v429_v40  ;;  %v3139_v33 = vld [vmem:[#allocation8 + $0x348] sm:$0xf]  ;;  %v3876_v34 = vld [vmem:[#allocation8 + $0x354] sm:$0xf0]  ;;  %v3858_v17 = vld [vmem:[#allocation8 + $0x2cc] sm:$0xf] }
  0xd6   :  { %v2851_v39 = vld [vmem:[#allocation8 + $0x108] sm:$0xf]  ;;  %v3804_v40 = vld [vmem:[#allocation8 + $0x114] sm:$0xf0]  ;;  %v3140_v44 = vor.u32 %v3876_v34, %v3139_v33  ;;  %v3077_v18 = vld [vmem:[#allocation8 + $0x2d8] sm:$0xf0] }
  0xd7   :  { %1236 = vmatmul.bf16.vlgmr.msrb.gmra.mxu2 %v4319_v46  ;;  %1249 = vmatmul.bf16.vlgmr.msrb.gmra.mxu3 %v4321_v47  ;;  %v2852_v54 = vor.u32 %v3804_v40, %v2851_v39  ;;  %v3107_v1 = vld [vmem:[#allocation8 + $0x308] sm:$0xf]  ;;  %v3890_v19 = vld [vmem:[#allocation8 + $0x3cc] sm:$0xf]  ;;  %v3205_v22 = vld [vmem:[#allocation8 + $0x3d8] sm:$0xf0] }
  0xd8   :  { %1332 = vmatpush.bf16.msrb.mxu2 %v3092_v41  ;;  %1345 = vmatpush.bf16.msrb.mxu3 %v3220_v42  ;;  %v3798_v41 = vld [vmem:[#allocation8 + $0xec] sm:$0xf]  ;;  %v2837_v42 = vld [vmem:[#allocation8 + $0xf8] sm:$0xf0]  ;;  %v3108_v11 = vor.u32 %v3868_v2, %v3107_v1  ;;  %v3955_v37 = vld [vmem:[#allocation11 + $0x1cc] sm:$0xf0] }
  0xd9   :  { %1308 = vmatpush.bf16.msrb.mxu0 %v2804_v43  ;;  %1321 = vmatpush.bf16.msrb.mxu1 %v2932_v48  ;;  %v3012_v43 = vor.u32 %v3844_v32, %v3011_v31  ;;  %v2965_v48 = vld [vmem:[#allocation8 + $0x1f8] sm:$0xf0]  ;;  %v3786_v25 = vld [vmem:[#allocation8 + $0x8c] sm:$0xf] }
  0xda   :  { %v2789_v26 = vld [vmem:[#allocation8 + $0x98] sm:$0xf0]  ;;  %v3854_v31 = vld [vmem:[#allocation8 + $0x2ac] sm:$0xf] }
  0xdb   :  { %v3061_v32 = vld [vmem:[#allocation8 + $0x2b8] sm:$0xf0]  ;;  %v3886_v33 = vld [vmem:[#allocation8 + $0x3ac] sm:$0xf] }
  0xdc   :  { %1333 = vmatpush.bf16.msrb.mxu2 %v3076_v55  ;;  %1346 = vmatpush.bf16.msrb.mxu3 %v3204_v56  ;;  %v2840_v55 = vor.u32 %v3798_v41, %v2837_v42  ;;  %v2968_v56 = vor.u32 %v3830_v45, %v2965_v48  ;;  %v3189_v34 = vld [vmem:[#allocation8 + $0x3b8] sm:$0xf0]  ;;  %v3814_v39 = vld [vmem:[#allocation8 + $0x16c] sm:$0xf]  ;;  %v3064_v41 = vor.u32 %v3854_v31, %v3061_v32  ;;  %v3323_v32 = vld [vmem:[#allocation11 + $0xc0] sm:$0xf] }
  0xdd   :  { %1309 = vmatpush.bf16.msrb.mxu0 %v2788_v58  ;;  %1322 = vmatpush.bf16.msrb.mxu1 %v2916_v59  ;;  %v2821_v58 = vld [vmem:[#allocation8 + $0xd8] sm:$0xf0]  ;;  %v3826_v59 = vld [vmem:[#allocation8 + $0x1cc] sm:$0xf]  ;;  %v3192_v42 = vor.u32 %v3886_v33, %v3189_v34 }
  0xde   :  { %v2824_v7 = vor.u32 %v3794_v57, %v2821_v58  ;;  %v2952_v8 = vor.u32 %v3826_v59, %v2949_v62  ;;  %v2901_v40 = vld [vmem:[#allocation8 + $0x178] sm:$0xf0]  ;;  %v3882_v45 = vld [vmem:[#allocation8 + $0x38c] sm:$0xf] }
  0xdf   :  { %1262 = vmatmul.bf16.vlgmr.msra.gmra.mxu0 %v4313_v20  ;;  %1275 = vmatmul.bf16.vlgmr.msra.gmra.mxu1 %v4315_v21  ;;  %v3173_v48 = vld [vmem:[#allocation8 + $0x398] sm:$0xf0]  ;;  %v2904_v50 = vor.u32 %v3814_v39, %v2901_v40  ;;  %v3846_v57 = vld [vmem:[#allocation8 + $0x26c] sm:$0xf] }
  0xe0   :  { %1334 = vmatpush.bf16.msrb.mxu2 %v3060_v3  ;;  %1347 = vmatpush.bf16.msrb.mxu3 %v3188_v4  ;;  %v3862_v3 = vld [vmem:[#allocation8 + $0x2ec] sm:$0xf]  ;;  %v3093_v4 = vld [vmem:[#allocation8 + $0x2f8] sm:$0xf0] }
  0xe1   :  { %1310 = vmatpush.bf16.msrb.mxu0 %v2772_v9  ;;  %1323 = vmatpush.bf16.msrb.mxu1 %v2900_v10  ;;  %v3790_v9 = vld [vmem:[#allocation8 + $0xac] sm:$0xf]  ;;  %v2980_v10 = vor.u32 %v3836_v0, %v2979_v63  ;;  %v2757_v52 = vld [vmem:[#allocation8 + $0x58] sm:$0xf0] }
  0xe2   :  { %v3029_v58 = vld [vmem:[#allocation8 + $0x278] sm:$0xf0]  ;;  %v3878_v59 = vld [vmem:[#allocation8 + $0x36c] sm:$0xf] }
  0xe3   :  { %v3774_v63 = vld [vmem:[#allocation8 + $0x2c] sm:$0xf]  ;;  %v2741_v0 = vld [vmem:[#allocation8 + $0x38] sm:$0xf0] }
  0xe4   :  { %1335 = vmatpush.bf16.msrb.mxu2 %v3044_v15  ;;  %1348 = vmatpush.bf16.msrb.mxu3 %v3172_v16  ;;  %v3096_v15 = vor.u32 %v3862_v3, %v3093_v4  ;;  %v3224_v16 = vor.u32 %v3894_v5, %v3221_v6  ;;  %v3806_v1 = vld [vmem:[#allocation8 + $0x12c] sm:$0xf]  ;;  %v2869_v2 = vld [vmem:[#allocation8 + $0x138] sm:$0xf0]  ;;  %v3032_v3 = vor.u32 %v3846_v57, %v3029_v58  ;;  %v3911_v57 = vld [vmem:[#allocation11 + $0x6c] sm:$0xf0] }
  0xe5   :  { %1311 = vmatpush.bf16.msrb.mxu0 %v2756_v23  ;;  %1324 = vmatpush.bf16.msrb.mxu1 %v2884_v24  ;;  %v2808_v23 = vor.u32 %v3790_v9, %v2805_v12  ;;  %v2936_v24 = vor.u32 %v3822_v13, %v2933_v14  ;;  %v3842_v5 = vld [vmem:[#allocation8 + $0x24c] sm:$0xf]  ;;  %v3013_v6 = vld [vmem:[#allocation8 + $0x258] sm:$0xf0]  ;;  %v2744_v9 = vor.u32 %v3774_v63, %v2741_v0  ;;  %v3907_v63 = vld [vmem:[#allocation11 + $0x4c] sm:$0xf0] }
  0xe6   :  { %v2725_v12 = vld [vmem:[#allocation8 + $0x18] sm:$0xf0]  ;;  %v3802_v13 = vld [vmem:[#allocation8 + $0x10c] sm:$0xf] }
  0xe7   :  { %1288 = vmatmul.bf16.vlgmr.msra.gmra.mxu2 %v4319_v46  ;;  %1301 = vmatmul.bf16.vlgmr.msra.gmra.mxu3 %v4321_v47  ;;  %v2853_v14 = vld [vmem:[#allocation8 + $0x118] sm:$0xf0]  ;;  %v3866_v39 = vld [vmem:[#allocation8 + $0x30c] sm:$0xf] }
  0xe8   :  { %1336 = vmatpush.bf16.msrb.mxu2 %v3028_v29  ;;  %1349 = vmatpush.bf16.msrb.mxu3 %v3156_v30  ;;  %v3080_v29 = vor.u32 %v3858_v17, %v3077_v18  ;;  %v3208_v30 = vor.u32 %v3890_v19, %v3205_v22  ;;  %v3016_v17 = vor.u32 %v3842_v5, %v3013_v6  ;;  %v3927_v19 = vld [vmem:[#allocation11 + $0xec] sm:$0xf0]  ;;  %v3467_v22 = vld [vmem:[#allocation11 + $0x1e0] sm:$0xf]  ;;  %v2981_v38 = vld [vmem:[#allocation8 + $0x218] sm:$0xf0] }
  0xe9   :  { %1312 = vmatpush.bf16.msrb.mxu0 %v2740_v35  ;;  %1325 = vmatpush.bf16.msrb.mxu1 %v2868_v36  ;;  %v2792_v35 = vor.u32 %v3786_v25, %v2789_v26  ;;  %v2920_v36 = vor.u32 %v3818_v27, %v2917_v28  ;;  %v3870_v25 = vld [vmem:[#allocation8 + $0x32c] sm:$0xf]  ;;  %v3125_v26 = vld [vmem:[#allocation8 + $0x338] sm:$0xf0]  ;;  %v2856_v28 = vor.u32 %v3802_v13, %v2853_v14  ;;  %v3371_v5 = vld [vmem:[#allocation11 + $0x120] sm:$0xf] }
  0xea   :  { %v3128_v34 = vor.u32 %v3870_v25, %v3125_v26  ;;  %v3109_v40 = vld [vmem:[#allocation8 + $0x318] sm:$0xf0]  ;;  %v3931_v13 = vld [vmem:[#allocation11 + $0x10c] sm:$0xf0]  ;;  %v3925_v14 = vld [vmem:[#allocation11 + $0xe4] sm:$0xf] }
  0xeb   :  { %v3953_v25 = vld [vmem:[#allocation11 + $0x1c4] sm:$0xf] }
  0xec   :  { %1337 = vmatpush.bf16.msrb.mxu2 %v3012_v43  ;;  %1350 = vmatpush.bf16.msrb.mxu3 %v3140_v44  ;;  %v3850_v43 = vld [vmem:[#allocation8 + $0x28c] sm:$0xf]  ;;  %v3045_v44 = vld [vmem:[#allocation8 + $0x298] sm:$0xf0] }
  0xed   :  { %1313 = vmatpush.bf16.msrb.mxu0 %v2724_v53  ;;  %1326 = vmatpush.bf16.msrb.mxu1 %v2852_v54  ;;  %v3810_v53 = vld [vmem:[#allocation8 + $0x14c] sm:$0xf]  ;;  %v2885_v54 = vld [vmem:[#allocation8 + $0x158] sm:$0xf0] }
  0xee   :  { %v2888_v62 = vor.u32 %v3810_v53, %v2885_v54  ;;  %v3291_v53 = vld [vmem:[#allocation11 + $0x80] sm:$0xf]  ;;  %v3915_v54 = vld [vmem:[#allocation11 + $0x8c] sm:$0xf0] }
  0xf0   :  { %1338 = vmatpush.bf16.msrb.mxu2 %v2996_v60  ;;  %1351 = vmatpush.bf16.msrb.mxu3 %v3124_v61  ;;  %v3157_v60 = vld [vmem:[#allocation8 + $0x378] sm:$0xf0]  ;;  %v2760_v61 = vor.u32 %v3778_v51, %v2757_v52 }
  0xf1   :  { %1358 = vmatpush.bf16.msra.mxu0 %v2840_v55  ;;  %1371 = vmatpush.bf16.msra.mxu1 %v2968_v56  ;;  %v3048_v55 = vor.u32 %v3850_v43, %v3045_v44  ;;  %v3176_v56 = vor.u32 %v3882_v45, %v3173_v48  ;;  %v3160_v4 = vor.u32 %v3878_v59, %v3157_v60  ;;  %v3307_v45 = vld [vmem:[#allocation11 + $0xa0] sm:$0xf]  ;;  %v3919_v48 = vld [vmem:[#allocation11 + $0xac] sm:$0xf0] }
  0xf2   :  { %1314 = vmatmul.bf16.vlgmr.msrb.gmra.mxu0 %v4313_v20  ;;  %1327 = vmatmul.bf16.vlgmr.msrb.gmra.mxu1 %v4315_v21  ;;  %v3112_v44 = vor.u32 %v3866_v39, %v3109_v40  ;;  %v3308_v51 = vor.u32 %v3919_v48, %v3307_v45  ;;  %v3403_v59 = vld [vmem:[#allocation11 + $0x160] sm:$0xf]  ;;  %v3943_v60 = vld [vmem:[#allocation11 + $0x16c] sm:$0xf0] }
  0xf3   :  { %v3723_v45 = vld [vmem:[#allocation11 + $0x3e0] sm:$0xf] }
  0xf4   :  { %1339 = vmatpush.bf16.msrb.mxu2 %v2980_v10  ;;  %1352 = vmatpush.bf16.msrb.mxu3 %v3108_v11  ;;  %v2872_v10 = vor.u32 %v3806_v1, %v2869_v2  ;;  %v3770_v11 = vld [vmem:[#allocation8 + $0xc] sm:$0xf]  ;;  %v3939_v1 = vld [vmem:[#allocation11 + $0x14c] sm:$0xf0] }
  0xf5   :  { %1359 = vmatpush.bf16.msra.mxu0 %v2824_v7  ;;  %1372 = vmatpush.bf16.msra.mxu1 %v2952_v8  ;;  %v3874_v7 = vld [vmem:[#allocation8 + $0x34c] sm:$0xf]  ;;  %v3141_v8 = vld [vmem:[#allocation8 + $0x358] sm:$0xf0]  ;;  %v2728_v27 = vor.u32 %v3770_v11, %v2725_v12  ;;  %v3355_v11 = vld [vmem:[#allocation11 + $0x100] sm:$0xf] }
  0xf6   :  { %v3144_v18 = vor.u32 %v3874_v7, %v3141_v8  ;;  %v3935_v7 = vld [vmem:[#allocation11 + $0x12c] sm:$0xf0] }
  0xf7   :  { %1340 = vmatmul.bf16.vlgmr.msrb.gmra.mxu2 %v4319_v46  ;;  %1353 = vmatmul.bf16.vlgmr.msrb.gmra.mxu3 %v4321_v47  ;;  %v3372_v8 = vor.u32 %v3935_v7, %v3371_v5  ;;  %v3691_v5 = vld [vmem:[#allocation11 + $0x3a0] sm:$0xf]  ;;  %v4015_v7 = vld [vmem:[#allocation11 + $0x3ac] sm:$0xf0] }
  0xf8   :  { %1384 = vmatpush.bf16.msra.mxu2 %v3096_v15  ;;  %1397 = vmatpush.bf16.msra.mxu3 %v3224_v16  ;;  %v3838_v15 = vld [vmem:[#allocation8 + $0x22c] sm:$0xf]  ;;  %v3339_v16 = vld [vmem:[#allocation11 + $0xe0] sm:$0xf] }
  0xf9   :  { %1360 = vmatpush.bf16.msra.mxu0 %v2808_v23  ;;  %1373 = vmatpush.bf16.msra.mxu1 %v2936_v24  ;;  %v3959_v23 = vld [vmem:[#allocation11 + $0x1ec] sm:$0xf0]  ;;  %v2997_v24 = vld [vmem:[#allocation8 + $0x238] sm:$0xf0] }
  0xfa   :  { %v3468_v31 = vor.u32 %v3959_v23, %v3467_v22  ;;  %v3000_v33 = vor.u32 %v3838_v15, %v2997_v24  ;;  %v3341_v15 = vld [vmem:[#allocation11 + $0xf0] sm:$0xf0]  ;;  %v3921_v23 = vld [vmem:[#allocation11 + $0xc4] sm:$0xf] }
  0xfb   :  { %v3325_v24 = vld [vmem:[#allocation11 + $0xd0] sm:$0xf0] }
  0xfc   :  { %1385 = vmatpush.bf16.msra.mxu2 %v3080_v29  ;;  %1398 = vmatpush.bf16.msra.mxu3 %v3208_v30  ;;  %v3834_v29 = vld [vmem:[#allocation8 + $0x20c] sm:$0xf]  ;;  %v3340_v30 = vor.u32 %v3927_v19, %v3339_v16  ;;  %v3356_v16 = vor.u32 %v3931_v13, %v3355_v11  ;;  %v3469_v19 = vld [vmem:[#allocation11 + $0x1f0] sm:$0xf0]  ;;  %v3328_v26 = vor.u32 %v3921_v23, %v3325_v24  ;;  %v3933_v11 = vld [vmem:[#allocation11 + $0x124] sm:$0xf] }
  0xfd   :  { %1361 = vmatpush.bf16.msra.mxu0 %v2792_v35  ;;  %1374 = vmatpush.bf16.msra.mxu1 %v2920_v36  ;;  %v3923_v35 = vld [vmem:[#allocation11 + $0xcc] sm:$0xf0]  ;;  %v3451_v36 = vld [vmem:[#allocation11 + $0x1c0] sm:$0xf]  ;;  %v2984_v43 = vor.u32 %v3834_v29, %v2981_v38  ;;  %v3917_v29 = vld [vmem:[#allocation11 + $0xa4] sm:$0xf] }
  0xfe   :  { %v3373_v13 = vld [vmem:[#allocation11 + $0x130] sm:$0xf0]  ;;  %v4011_v23 = vld [vmem:[#allocation11 + $0x38c] sm:$0xf0]  ;;  %v3897_v24 = vld [vmem:[#allocation11 + $0x4] sm:$0xf] }
 0x100   :  { %1386 = vmatpush.bf16.msra.mxu2 %v3064_v41  ;;  %1399 = vmatpush.bf16.msra.mxu3 %v3192_v42  ;;  %v3324_v41 = vor.u32 %v3923_v35, %v3323_v32  ;;  %v3452_v42 = vor.u32 %v3955_v37, %v3451_v36  ;;  %v3913_v35 = vld [vmem:[#allocation11 + $0x84] sm:$0xf]  ;;  %v3293_v36 = vld [vmem:[#allocation11 + $0x90] sm:$0xf0] }
 0x101   :  { %1362 = vmatpush.bf16.msra.mxu0 %v2776_v49  ;;  %1375 = vmatpush.bf16.msra.mxu1 %v2904_v50  ;;  %v3435_v49 = vld [vmem:[#allocation11 + $0x1a0] sm:$0xf]  ;;  %v3951_v50 = vld [vmem:[#allocation11 + $0x1ac] sm:$0xf0]  ;;  %v3945_v37 = vld [vmem:[#allocation11 + $0x184] sm:$0xf]  ;;  %v3296_v40 = vor.u32 %v3913_v35, %v3293_v36 }
 0x102   :  { %v3436_v52 = vor.u32 %v3951_v50, %v3435_v49  ;;  %v4023_v49 = vld [vmem:[#allocation11 + $0x3ec] sm:$0xf0]  ;;  %v3909_v50 = vld [vmem:[#allocation11 + $0x64] sm:$0xf]  ;;  %v3659_v35 = vld [vmem:[#allocation11 + $0x360] sm:$0xf] }
 0x104   :  { %1387 = vmatpush.bf16.msra.mxu2 %v3048_v55  ;;  %1400 = vmatpush.bf16.msra.mxu3 %v3176_v56  ;;  %v3292_v55 = vor.u32 %v3915_v54, %v3291_v53  ;;  %v3275_v56 = vld [vmem:[#allocation11 + $0x60] sm:$0xf]  ;;  %v3941_v53 = vld [vmem:[#allocation11 + $0x164] sm:$0xf]  ;;  %v3405_v54 = vld [vmem:[#allocation11 + $0x170] sm:$0xf0] }
 0x105   :  { %1363 = vmatpush.bf16.msra.mxu0 %v2760_v61  ;;  %1376 = vmatpush.bf16.msra.mxu1 %v2888_v62  ;;  %v3276_v61 = vor.u32 %v3911_v57, %v3275_v56  ;;  %v3404_v62 = vor.u32 %v3943_v60, %v3403_v59  ;;  %v3987_v56 = vld [vmem:[#allocation11 + $0x2cc] sm:$0xf0]  ;;  %v3707_v57 = vld [vmem:[#allocation11 + $0x3c0] sm:$0xf]  ;;  %v3905_v60 = vld [vmem:[#allocation11 + $0x44] sm:$0xf] }
 0x106   :  { %v4019_v59 = vld [vmem:[#allocation11 + $0x3cc] sm:$0xf0] }
 0x108   :  { %1388 = vmatpush.bf16.msra.mxu2 %v3032_v3  ;;  %1401 = vmatpush.bf16.msra.mxu3 %v3160_v4  ;;  %v3243_v3 = vld [vmem:[#allocation11 + $0x20] sm:$0xf]  ;;  %v3903_v4 = vld [vmem:[#allocation11 + $0x2c] sm:$0xf0] }
 0x109   :  { %1364 = vmatpush.bf16.msra.mxu0 %v2744_v9  ;;  %1377 = vmatpush.bf16.msra.mxu1 %v2872_v10  ;;  %v3244_v6 = vor.u32 %v3903_v4, %v3243_v3  ;;  %v3227_v9 = vld [vmem:[#allocation11] sm:$0xf]  ;;  %v3899_v10 = vld [vmem:[#allocation11 + $0xc] sm:$0xf0] }
 0x10a   :  { %v3228_v12 = vor.u32 %v3899_v10, %v3227_v9  ;;  %v3563_v3 = vld [vmem:[#allocation11 + $0x2a0] sm:$0xf]  ;;  %v3983_v4 = vld [vmem:[#allocation11 + $0x2ac] sm:$0xf0]  ;;  %v3901_v9 = vld [vmem:[#allocation11 + $0x24] sm:$0xf] }
 0x10b   :  { %v3245_v10 = vld [vmem:[#allocation11 + $0x30] sm:$0xf0] }
 0x10c   :  { %1389 = vmatpush.bf16.msra.mxu2 %v3016_v17  ;;  %1402 = vmatpush.bf16.msra.mxu3 %v3144_v18  ;;  %v3344_v17 = vor.u32 %v3925_v14, %v3341_v15  ;;  %v3957_v18 = vld [vmem:[#allocation11 + $0x1e4] sm:$0xf] }
 0x10d   :  { %1365 = vmatpush.bf16.msra.mxu0 %v2728_v27  ;;  %1378 = vmatpush.bf16.msra.mxu1 %v2856_v28  ;;  %v3472_v22 = vor.u32 %v3957_v18, %v3469_v19  ;;  %v3453_v27 = vld [vmem:[#allocation11 + $0x1d0] sm:$0xf0]  ;;  %v3979_v18 = vld [vmem:[#allocation11 + $0x28c] sm:$0xf0]  ;;  %v3675_v19 = vld [vmem:[#allocation11 + $0x380] sm:$0xf] }
 0x10e   :  { %v3456_v28 = vor.u32 %v3953_v25, %v3453_v27  ;;  %v3229_v25 = vld [vmem:[#allocation11 + $0x10] sm:$0xf0] }
 0x10f   :  { %v3232_v27 = vor.u32 %v3897_v24, %v3229_v25  ;;  %v3581_v24 = vld [vmem:[#allocation11 + $0x2d0] sm:$0xf0] }
 0x110   :  { %1390 = vmatpush.bf16.msra.mxu2 %v3000_v33  ;;  %1403 = vmatpush.bf16.msra.mxu3 %v3128_v34  ;;  %v3437_v33 = vld [vmem:[#allocation11 + $0x1b0] sm:$0xf0] }
 0x111   :  { %2235 = vmatpush.bf16.msrb.mxu0 %v3340_v30  ;;  %2248 = vmatpush.bf16.msrb.mxu1 %v3468_v31  ;;  %v3309_v30 = vld [vmem:[#allocation11 + $0xb0] sm:$0xf0]  ;;  %v3949_v31 = vld [vmem:[#allocation11 + $0x1a4] sm:$0xf] }
 0x112   :  { %1366 = vmatmul.bf16.vlgmr.msra.gmra.mxu0 %v4313_v20  ;;  %1379 = vmatmul.bf16.vlgmr.msra.gmra.mxu1 %v4315_v21  ;;  %v3419_v20 = vld [vmem:[#allocation11 + $0x180] sm:$0xf]  ;;  %v3947_v21 = vld [vmem:[#allocation11 + $0x18c] sm:$0xf0]  ;;  %v3312_v32 = vor.u32 %v3917_v29, %v3309_v30  ;;  %v3440_v34 = vor.u32 %v3949_v31, %v3437_v33  ;;  %v3357_v29 = vld [vmem:[#allocation11 + $0x110] sm:$0xf0] }
 0x113   :  { %v3420_v58 = vor.u32 %v3947_v21, %v3419_v20  ;;  %v3579_v21 = vld [vmem:[#allocation11 + $0x2c0] sm:$0xf] }
 0x114   :  { %1391 = vmatpush.bf16.msra.mxu2 %v2984_v43  ;;  %1404 = vmatpush.bf16.msra.mxu3 %v3112_v44  ;;  %v3595_v43 = vld [vmem:[#allocation11 + $0x2e0] sm:$0xf]  ;;  %v3991_v44 = vld [vmem:[#allocation11 + $0x2ec] sm:$0xf0] }
 0x115   :  { %2236 = vmatpush.bf16.msrb.mxu0 %v3324_v41  ;;  %2249 = vmatpush.bf16.msrb.mxu1 %v3452_v42  ;;  %v3421_v41 = vld [vmem:[#allocation11 + $0x190] sm:$0xf0]  ;;  %v3596_v48 = vor.u32 %v3991_v44, %v3595_v43  ;;  %v3531_v33 = vld [vmem:[#allocation11 + $0x260] sm:$0xf]  ;;  %v1415_v43 = vld [vmem:[#allocation1] sm:$0xff] }
 0x116   :  { %v3424_v42 = vor.u32 %v3945_v37, %v3421_v41  ;;  %v4007_v37 = vld [vmem:[#allocation11 + $0x36c] sm:$0xf0]  ;;  %v1416_v44 = vld [vmem:[#allocation1 + $0x9] sm:$0xff] }
 0x117   :  { %1392 = vmatmul.bf16.vlgmr.msra.gmra.mxu2 %v4319_v46  ;;  %1405 = vmatmul.bf16.vlgmr.msra.gmra.mxu3 %v4321_v47  ;;  %v3259_v46 = vld [vmem:[#allocation11 + $0x40] sm:$0xf] }
 0x118   :  { %v3387_v47 = vld [vmem:[#allocation11 + $0x140] sm:$0xf]  ;;  %v3260_v0 = vor.u32 %v3907_v63, %v3259_v46  ;;  %2261 = vmatpush.bf16.msrb.mxu2 %v3596_v48  ;;  %v3708_v63 = vor.u32 %v4019_v59, %v3707_v57  ;;  %v3971_v48 = vld [vmem:[#allocation11 + $0x24c] sm:$0xf0] }
 0x119   :  { %2237 = vmatpush.bf16.msrb.mxu0 %v3308_v51  ;;  %2250 = vmatpush.bf16.msrb.mxu1 %v3436_v52  ;;  %v3388_v2 = vor.u32 %v3939_v1, %v3387_v47  ;;  %v3724_v51 = vor.u32 %v4023_v49, %v3723_v45  ;;  %v3277_v52 = vld [vmem:[#allocation11 + $0x70] sm:$0xf0]  ;;  %v3515_v45 = vld [vmem:[#allocation11 + $0x240] sm:$0xf]  ;;  %v3967_v57 = vld [vmem:[#allocation11 + $0x22c] sm:$0xf0] }
 0x11a   :  { %v3280_v20 = vor.u32 %v3909_v50, %v3277_v52  ;;  %v3389_v1 = vld [vmem:[#allocation11 + $0x150] sm:$0xf0]  ;;  %v3643_v49 = vld [vmem:[#allocation11 + $0x340] sm:$0xf]  ;;  %v3516_v50 = vor.u32 %v3971_v48, %v3515_v45 }
 0x11b   :  { %2274 = vmatpush.bf16.msrb.mxu3 %v3724_v51  ;;  %v4003_v51 = vld [vmem:[#allocation11 + $0x34c] sm:$0xf0] }
 0x11c   :  { %v3644_v52 = vor.u32 %v4003_v51, %v3643_v49  ;;  %v3347_v49 = vld [vmem:[#allocation11 + $0xe8] sm:$0xf] }
 0x11d   :  { %2238 = vmatpush.bf16.msrb.mxu0 %v3292_v55  ;;  %2251 = vmatpush.bf16.msrb.mxu1 %v3420_v58  ;;  %v3408_v55 = vor.u32 %v3941_v53, %v3405_v54  ;;  %v3580_v58 = vor.u32 %v3987_v56, %v3579_v21  ;;  %v3499_v56 = vld [vmem:[#allocation11 + $0x220] sm:$0xf]  ;;  %v3475_v51 = vld [vmem:[#allocation11 + $0x1e8] sm:$0xf] }
 0x11e   :  { %v3500_v59 = vor.u32 %v3967_v57, %v3499_v56  ;;  %v3677_v57 = vld [vmem:[#allocation11 + $0x390] sm:$0xf0] }
 0x11f   :  { %2262 = vmatpush.bf16.msrb.mxu2 %v3580_v58  ;;  %2275 = vmatpush.bf16.msrb.mxu3 %v3708_v63  ;;  %v3627_v58 = vld [vmem:[#allocation11 + $0x320] sm:$0xf] }
 0x121   :  { %2239 = vmatpush.bf16.msrb.mxu0 %v3276_v61  ;;  %2252 = vmatpush.bf16.msrb.mxu1 %v3404_v62  ;;  %v3261_v61 = vld [vmem:[#allocation11 + $0x50] sm:$0xf0] }
 0x122   :  { %v3264_v47 = vor.u32 %v3905_v60, %v3261_v61  ;;  %v3999_v60 = vld [vmem:[#allocation11 + $0x32c] sm:$0xf0] }
 0x125   :  { %2240 = vmatpush.bf16.msrb.mxu0 %v3260_v0  ;;  %2253 = vmatpush.bf16.msrb.mxu1 %v3388_v2  ;;  %v3937_v0 = vld [vmem:[#allocation11 + $0x144] sm:$0xf] }
 0x126   :  { %v3392_v2 = vor.u32 %v3937_v0, %v3389_v1 }
 0x129   :  { %2241 = vmatpush.bf16.msrb.mxu0 %v3244_v6  ;;  %2254 = vmatpush.bf16.msrb.mxu1 %v3372_v8  ;;  %v3564_v6 = vor.u32 %v3983_v4, %v3563_v3  ;;  %v3692_v8 = vor.u32 %v4015_v7, %v3691_v5  ;;  %v3483_v3 = vld [vmem:[#allocation11 + $0x200] sm:$0xf]  ;;  %v3963_v4 = vld [vmem:[#allocation11 + $0x20c] sm:$0xf0]  ;;  %v3597_v7 = vld [vmem:[#allocation11 + $0x2f0] sm:$0xf0] }
 0x12a   :  { %v3611_v5 = vld [vmem:[#allocation11 + $0x300] sm:$0xf] }
 0x12b   :  { %2263 = vmatpush.bf16.msrb.mxu2 %v3564_v6  ;;  %2276 = vmatpush.bf16.msrb.mxu3 %v3692_v8  ;;  %v3989_v6 = vld [vmem:[#allocation11 + $0x2e4] sm:$0xf] }
 0x12d   :  { %2242 = vmatpush.bf16.msrb.mxu0 %v3228_v12  ;;  %2255 = vmatpush.bf16.msrb.mxu1 %v3356_v16  ;;  %v3248_v12 = vor.u32 %v3901_v9, %v3245_v10  ;;  %v3376_v16 = vor.u32 %v3933_v11, %v3373_v13  ;;  %v3600_v11 = vor.u32 %v3989_v6, %v3597_v7  ;;  %v3725_v13 = vld [vmem:[#allocation11 + $0x3f0] sm:$0xf0] }
 0x12e   :  { %v3661_v7 = vld [vmem:[#allocation11 + $0x370] sm:$0xf0] }
 0x131   :  { %2287 = vmatpush.bf16.msra.mxu0 %v3344_v17  ;;  %2300 = vmatpush.bf16.msra.mxu1 %v3472_v22  ;;  %v3547_v17 = vld [vmem:[#allocation11 + $0x280] sm:$0xf] }
 0x132   :  { %v3548_v22 = vor.u32 %v3979_v18, %v3547_v17 }
 0x134   :  { %2264 = vmatpush.bf16.msrb.mxu2 %v3548_v22 }
 0x135   :  { %2288 = vmatpush.bf16.msra.mxu0 %v3328_v26  ;;  %2301 = vmatpush.bf16.msra.mxu1 %v3456_v28  ;;  %v3676_v26 = vor.u32 %v4011_v23, %v3675_v19  ;;  %v3929_v28 = vld [vmem:[#allocation11 + $0x104] sm:$0xf] }
 0x136   :  { %v3985_v23 = vld [vmem:[#allocation11 + $0x2c4] sm:$0xf] }
 0x137   :  { %2277 = vmatpush.bf16.msrb.mxu3 %v3676_v26 }
 0x139   :  { %2289 = vmatpush.bf16.msra.mxu0 %v3312_v32  ;;  %2302 = vmatpush.bf16.msra.mxu1 %v3440_v34  ;;  %v3360_v32 = vor.u32 %v3929_v28, %v3357_v29  ;;  %v3975_v34 = vld [vmem:[#allocation11 + $0x26c] sm:$0xf0]  ;;  %v3709_v28 = vld [vmem:[#allocation11 + $0x3d0] sm:$0xf0] }
 0x13a   :  { %v3532_v36 = vor.u32 %v3975_v34, %v3531_v33  ;;  %v3981_v34 = vld [vmem:[#allocation11 + $0x2a4] sm:$0xf] }
 0x13c   :  { %2265 = vmatpush.bf16.msrb.mxu2 %v3532_v36  ;;  %v4013_v36 = vld [vmem:[#allocation11 + $0x3a4] sm:$0xf] }
 0x13d   :  { %2290 = vmatpush.bf16.msra.mxu0 %v3296_v40  ;;  %2303 = vmatpush.bf16.msra.mxu1 %v3424_v42  ;;  %v3660_v40 = vor.u32 %v4007_v37, %v3659_v35  ;;  %v3565_v35 = vld [vmem:[#allocation11 + $0x2b0] sm:$0xf0] }
 0x13f   :  { %2278 = vmatpush.bf16.msrb.mxu3 %v3660_v40  ;;  %v3568_v40 = vor.u32 %v3981_v34, %v3565_v35  ;;  %v3965_v34 = vld [vmem:[#allocation11 + $0x224] sm:$0xf]  ;;  %v3501_v35 = vld [vmem:[#allocation11 + $0x230] sm:$0xf0] }
 0x140   :  { %2266 = vmatpush.bf16.msrb.mxu2 %v3516_v50  ;;  %v3928_v50 = vld [vmem:[#allocation11 + $0xf4] sm:$0xf0] }
 0x141   :  { %2291 = vmatpush.bf16.msra.mxu0 %v3280_v20  ;;  %2304 = vmatpush.bf16.msra.mxu1 %v3408_v55  ;;  %v1419_v20 = vpack.i.b16 %v1415_v43, %v1415_v43  ;;  %v1422_v55 = vpack.i.b16 %v1416_v44, %v1416_v44 }
 0x143   :  { %2279 = vmatpush.bf16.msrb.mxu3 %v3644_v52  ;;  %v1421_v0 = vperm.slane %v1419_v20, 0  ;;  %v1424_v1 = vperm.slane %v1422_v55, 0  ;;  %v3977_v52 = vld [vmem:[#allocation11 + $0x284] sm:$0xf] }
 0x144   :  { %2267 = vmatpush.bf16.msrb.mxu2 %v3500_v59 }
 0x145   :  { %2292 = vmatpush.bf16.msra.mxu0 %v3264_v47  ;;  %2305 = vmatpush.bf16.msra.mxu1 %v3392_v2  ;;  %v1435_v19 = vunpack.c.l.bf16 %v1421_v0  ;;  %v1436_v22 = vunpack.c.l.bf16 %v1424_v1  ;;  %v3924_v0 = vld [vmem:[#allocation11 + $0xd4] sm:$0xf0]  ;;  %v3459_v1 = vld [vmem:[#allocation11 + $0x1c8] sm:$0xf] }
 0x149   :  { %2293 = vmatpush.bf16.msra.mxu0 %v3248_v12  ;;  %2306 = vmatpush.bf16.msra.mxu1 %v3376_v16  ;;  %v4021_v12 = vld [vmem:[#allocation11 + $0x3e4] sm:$0xf] }
 0x14a   :  { %v3728_v17 = vor.u32 %v4021_v12, %v3725_v13  ;;  %v3969_v13 = vld [vmem:[#allocation11 + $0x244] sm:$0xf] }
 0x14c   :  { %v4337_v38 = vpop.f32.mrf.mxu0  ;;  %v4339_v39 = vpop.f32.mrf.mxu1 }
 0x14d   :  { %2294 = vmatpush.bf16.msra.mxu0 %v3232_v27  ;;  %2307 = vmatpush.bf16.msra.mxu1 %v3360_v32  ;;  %v1225_v21 = vadd.f32 %v4339_v39, %v4337_v38  ;;  %v3484_v38 = vor.u32 %v3963_v4, %v3483_v3  ;;  %v3995_v39 = vld [vmem:[#allocation11 + $0x30c] sm:$0xf0]  ;;  %v3584_v27 = vor.u32 %v3985_v23, %v3581_v24  ;;  %v3645_v24 = vld [vmem:[#allocation11 + $0x350] sm:$0xf0] }
 0x14e   :  { %v3612_v10 = vor.u32 %v3995_v39, %v3611_v5  ;;  %v3973_v5 = vld [vmem:[#allocation11 + $0x264] sm:$0xf] }
 0x14f   :  { %2268 = vmatpush.bf16.msrb.mxu2 %v3484_v38  ;;  %v3533_v38 = vld [vmem:[#allocation11 + $0x270] sm:$0xf0]  ;;  %v4005_v39 = vld [vmem:[#allocation11 + $0x364] sm:$0xf] }
 0x150   :  { %v3536_v6 = vor.u32 %v3973_v5, %v3533_v38  ;;  %v3904_v5 = vld [vmem:[#allocation11 + $0x34] sm:$0xf0]  ;;  %v3379_v38 = vld [vmem:[#allocation11 + $0x128] sm:$0xf] }
 0x153   :  { %2313 = vmatpush.bf16.msra.mxu2 %v3600_v11 }
 0x154   :  { %v1213_v62 = vpop.f32.mrf.mxu0  ;;  %v1226_v46 = vpop.f32.mrf.mxu1 }
 0x155   :  { %v3628_v46 = vor.u32 %v3999_v60, %v3627_v58 }
 0x157   :  { %2280 = vmatpush.bf16.msrb.mxu3 %v3628_v46  ;;  %2314 = vmatpush.bf16.msra.mxu2 %v3584_v27  ;;  %v3331_v46 = vld [vmem:[#allocation11 + $0xc8] sm:$0xf] }
 0x158   :  { %v3332_v11 = vor.u32 %v3924_v0, %v3331_v46  ;;  %v3908_v46 = vld [vmem:[#allocation11 + $0x54] sm:$0xf0] }
 0x15a   :  { %v1237_v14 = vpop.f32.mrf.mxu2  ;;  %v4341_v15 = vpop.f32.mrf.mxu3 }
 0x15b   :  { %v1238_v61 = vadd.f32 %v1237_v14, %v1225_v21  ;;  %2281 = vmatpush.bf16.msrb.mxu3 %v3612_v10  ;;  %2315 = vmatpush.bf16.msra.mxu2 %v3568_v40  ;;  %v3960_v21 = vld [vmem:[#allocation11 + $0x1f4] sm:$0xf0]  ;;  %v3664_v10 = vor.u32 %v4005_v39, %v3661_v7 }
 0x15c   :  { %v1263_v30 = vpop.f32.mrf.mxu0  ;;  %v1276_v31 = vpop.f32.mrf.mxu1  ;;  %v3948_v40 = vld [vmem:[#allocation11 + $0x194] sm:$0xf0] }
 0x15d   :  { %v1277_v62 = vadd.f32 %v1276_v31, %v1263_v30  ;;  %v1251_v8 = vadd.f32 %v4341_v15, %v1238_v61  ;;  %v4017_v15 = vld [vmem:[#allocation11 + $0x3c4] sm:$0xf]  ;;  %v3936_v39 = vld [vmem:[#allocation11 + $0x134] sm:$0xf0] }
 0x15e   :  { %v3712_v31 = vor.u32 %v4017_v15, %v3709_v28  ;;  %v4360_v15 = vld [vmem:[#allocation1 + $0x12] sm:$0xff] }
 0x15f   :  { %2326 = vmatpush.bf16.msra.mxu3 %v3728_v17  ;;  %v3517_v17 = vld [vmem:[#allocation11 + $0x250] sm:$0xf0] }
 0x160   :  { %v3520_v23 = vor.u32 %v3969_v13, %v3517_v17  ;;  %v3235_v13 = vld [vmem:[#allocation11 + $0x8] sm:$0xf]  ;;  %v3900_v17 = vld [vmem:[#allocation11 + $0x14] sm:$0xf0] }
 0x162   :  { %v1239_v41 = vpop.f32.mrf.mxu2  ;;  %v1252_v42 = vpop.f32.mrf.mxu3 }
 0x163   :  { %2327 = vmatpush.bf16.msra.mxu3 %v3712_v31  ;;  %v3693_v41 = vld [vmem:[#allocation11 + $0x3b0] sm:$0xf0]  ;;  %v3916_v31 = vld [vmem:[#allocation11 + $0x94] sm:$0xf0] }
 0x164   :  { %v1265_v53 = vpop.f32.mrf.mxu0  ;;  %v1278_v54 = vpop.f32.mrf.mxu1  ;;  %v3696_v44 = vor.u32 %v4013_v36, %v3693_v41  ;;  %v3997_v36 = vld [vmem:[#allocation11 + $0x324] sm:$0xf]  ;;  %v3504_v41 = vor.u32 %v3965_v34, %v3501_v35  ;;  %v3922_v34 = vld [vmem:[#allocation11 + $0xcc] sm:$0xf] }
 0x165   :  { %v3549_v53 = vld [vmem:[#allocation11 + $0x290] sm:$0xf0]  ;;  %v4009_v54 = vld [vmem:[#allocation11 + $0x384] sm:$0xf] }
 0x166   :  { %v3552_v56 = vor.u32 %v3977_v52, %v3549_v53  ;;  %v3680_v58 = vor.u32 %v4009_v54, %v3677_v57  ;;  %v3993_v52 = vld [vmem:[#allocation11 + $0x304] sm:$0xf]  ;;  %v3411_v53 = vld [vmem:[#allocation11 + $0x168] sm:$0xf]  ;;  %v3944_v54 = vld [vmem:[#allocation11 + $0x174] sm:$0xf0] }
 0x167   :  { %2328 = vmatpush.bf16.msra.mxu3 %v3696_v44  ;;  %v3283_v44 = vld [vmem:[#allocation11 + $0x68] sm:$0xf] }
 0x168   :  { %2316 = vmatpush.bf16.msra.mxu2 %v3552_v56 }
 0x16a   :  { %v1289_v63 = vpop.f32.mrf.mxu2  ;;  %v1302_v47 = vpop.f32.mrf.mxu3 }
 0x16b   :  { %v1290_v2 = vadd.f32 %v1289_v63, %v1277_v62  ;;  %v3348_v63 = vor.u32 %v3928_v50, %v3347_v49  ;;  %2329 = vmatpush.bf16.msra.mxu3 %v3680_v58  ;;  %v3961_v50 = vld [vmem:[#allocation11 + $0x204] sm:$0xf] }
 0x16c   :  { %2317 = vmatpush.bf16.msra.mxu2 %v3536_v6 }
 0x16d   :  { %v1303_v9 = vadd.f32 %v1302_v47, %v1290_v2  ;;  %v3476_v47 = vor.u32 %v3960_v21, %v3475_v51  ;;  %v3956_v2 = vld [vmem:[#allocation11 + $0x1d4] sm:$0xf0]  ;;  %v3485_v51 = vld [vmem:[#allocation11 + $0x210] sm:$0xf0] }
 0x16e   :  { %v3460_v12 = vor.u32 %v3956_v2, %v3459_v1  ;;  %v3251_v2 = vld [vmem:[#allocation11 + $0x28] sm:$0xf] }
 0x16f   :  { %v4346_v14 = vpop.f32.mrf.mxu0  ;;  %v4348_v16 = vpop.f32.mrf.mxu1  ;;  %v1410_v18 = vpack.c.bf16 %v1303_v9, %v1251_v8  ;;  %v3315_v8 = vld [vmem:[#allocation11 + $0xa8] sm:$0xf]  ;;  %v3920_v9 = vld [vmem:[#allocation11 + $0xb4] sm:$0xf0]  ;;  %2330 = vmatpush.bf16.msra.mxu3 %v3664_v10  ;;  %v1425_v10 = vpack.i.b16 %v4360_v15, %v4360_v15 }
 0x170   :  { %2318 = vmatpush.bf16.msra.mxu2 %v3520_v23  ;;  %v1329_v6 = vadd.f32 %v4348_v16, %v4346_v14  ;;  %v3349_v16 = vld [vmem:[#allocation11 + $0xf8] sm:$0xf0] }
 0x171   :  { %v1431_v25 = vunpack.c.l.bf16 %v1410_v18  ;;  %v1432_v26 = vunpack.c.h.bf16 %v1410_v18  ;;  %v4001_v18 = vld [vmem:[#allocation11 + $0x344] sm:$0xf]  ;;  %v1427_v15 = vperm.slane %v1425_v10, 0  ;;  %v3942_v10 = vld [vmem:[#allocation11 + $0x16c] sm:$0xf] }
 0x172   :  { %v1291_v29 = vpop.f32.mrf.mxu2  ;;  %v1304_v30 = vpop.f32.mrf.mxu3  ;;  %v3648_v27 = vor.u32 %v4001_v18, %v3645_v24  ;;  %v3363_v18 = vld [vmem:[#allocation11 + $0x108] sm:$0xf]  ;;  %v3958_v24 = vld [vmem:[#allocation11 + $0x1ec] sm:$0xf] }
 0x173   :  { %v1439_v32 = vadd.f32 %v1435_v19, %v1431_v25  ;;  %v1440_v33 = vadd.f32 %v1436_v22, %v1432_v26  ;;  %v3443_v19 = vld [vmem:[#allocation11 + $0x1a8] sm:$0xf]  ;;  %v3952_v22 = vld [vmem:[#allocation11 + $0x1b4] sm:$0xf0]  ;;  %v2445_v26 = vld [vmem:[%s4402_s6] sm:$0xf] }
 0x174   :  { %v4362_v25 = vld [vmem:[#allocation1 + $0x1b] sm:$0xff]  ;;  %2331 = vmatpush.bf16.msra.mxu3 %v3648_v27  ;;  %2319 = vmatpush.bf16.msra.mxu2 %v3504_v41  ;;  %s4246_s6 = smov [#allocation14]  }
 0x175   :  { %v1443_v37 = vpack.c.bf16 %v1440_v33, %v1439_v32  ;;  %v3299_v30 = vld [vmem:[#allocation11 + $0x88] sm:$0xf]  ;;  %2447 = vst [vmem:[#allocation1] ss:$9 sm:$0xff] %v2445_v26  ;;  %v3316_v32 = vor.u32 %v3920_v9, %v3315_v8  ;;  %v3444_v33 = vor.u32 %v3952_v22, %v3443_v19  ;;  %v3252_v9 = vor.u32 %v3904_v5, %v3251_v2  ;;  %v3932_v19 = vld [vmem:[#allocation11 + $0x114] sm:$0xf0] }
 0x176   :  { %v3926_v22 = vld [vmem:[#allocation11 + $0xec] sm:$0xf]  ;;  %v3477_v26 = vld [vmem:[#allocation11 + $0x1f8] sm:$0xf0]  ;;  %v3603_v2 = vld [vmem:[#allocation11 + $0x2e8] sm:$0xf] }
 0x177   :  { %v1317_v42 = vpop.f32.mrf.mxu0  ;;  %v1330_v43 = vpop.f32.mrf.mxu1  ;;  %v1445_v45 = vunpack.c.l.bf16 %v1443_v37  ;;  %v1446_v48 = vunpack.c.h.bf16 %v1443_v37  ;;  %v3427_v37 = vld [vmem:[#allocation11 + $0x188] sm:$0xf]  ;;  %v3992_v5 = vld [vmem:[#allocation11 + $0x2f4] sm:$0xf0]  ;;  %s2570_s15 = sshll.u32 %s4246_s6, 4  ;;  %s2571_s15 = int_to_ptr.vmem [resolvable:$true] %s2570_s15 }
 0x178   :  { %v3629_v42 = vld [vmem:[#allocation11 + $0x330] sm:$0xf0]  ;;  %v3428_v49 = vor.u32 %v3948_v40, %v3427_v37  ;;  %v3954_v37 = vld [vmem:[#allocation11 + $0x1cc] sm:$0xf]  ;;  %v3461_v40 = vld [vmem:[#allocation11 + $0x1d8] sm:$0xf0] }
 0x179   :  { %v1449_v20 = vmul.f32 0.20019531, %v1445_v45  ;;  %v1450_v55 = vmul.f32 0.20019531, %v1446_v48  ;;  %v3632_v43 = vor.u32 %v3997_v36, %v3629_v42  ;;  %v1437_v42 = vunpack.c.l.bf16 %v1427_v15  ;;  %v3397_v15 = vld [vmem:[#allocation11 + $0x158] sm:$0xf0] }
 0x17a   :  { %v4350_v59 = vpop.f32.mrf.mxu2  ;;  %v4352_v60 = vpop.f32.mrf.mxu3 }
 0x17b   :  { %v1459_v61 = vmax.f32 %v1445_v45, %v1449_v20  ;;  %v1460_v62 = vmax.f32 %v1446_v48, %v1450_v55  ;;  %v3912_v45 = vld [vmem:[#allocation11 + $0x74] sm:$0xf0]  ;;  %v3300_v48 = vor.u32 %v3916_v31, %v3299_v30  ;;  %2332 = vmatpush.bf16.msra.mxu3 %v3632_v43  ;;  %v3488_v20 = vor.u32 %v3961_v50, %v3485_v51  ;;  %v3613_v55 = vld [vmem:[#allocation11 + $0x310] sm:$0xf0]  ;;  %v3317_v51 = vld [vmem:[#allocation11 + $0xb8] sm:$0xf0] }
 0x17c   :  { %v3616_v21 = vor.u32 %v3993_v52, %v3613_v55  ;;  %v3284_v58 = vor.u32 %v3912_v45, %v3283_v44  ;;  %v1342_v23 = vadd.f32 %v4350_v59, %v1329_v6  ;;  %v3333_v59 = vld [vmem:[#allocation11 + $0xd8] sm:$0xf0]  ;;  %v3464_v45 = vor.u32 %v3954_v37, %v3461_v40  ;;  %v3950_v52 = vld [vmem:[#allocation11 + $0x1ac] sm:$0xf] }
 0x17d   :  { %v4354_v3 = vpack.c.bf16 %v1459_v61, %v1459_v61  ;;  %v4356_v4 = vpack.c.bf16 %v1460_v62, %v1460_v62  ;;  %v3412_v61 = vor.u32 %v3944_v54, %v3411_v53  ;;  %v3267_v62 = vld [vmem:[#allocation11 + $0x48] sm:$0xf]  ;;  %2320 = vmatpush.bf16.msra.mxu2 %v3488_v20  ;;  %v3336_v44 = vor.u32 %v3922_v34, %v3333_v59  ;;  %v3445_v53 = vld [vmem:[#allocation11 + $0x1b8] sm:$0xf0]  ;;  %v4016_v59 = vld [vmem:[#allocation11 + $0x3b4] sm:$0xf0] }
 0x17e   :  { %v3268_v0 = vor.u32 %v3908_v46, %v3267_v62  ;;  %v1355_v35 = vadd.f32 %v4352_v60, %v1342_v23  ;;  %v3946_v62 = vld [vmem:[#allocation11 + $0x18c] sm:$0xf]  ;;  %v3429_v46 = vld [vmem:[#allocation11 + $0x198] sm:$0xf0] }
 0x17f   :  { %2243 = vmatmul.bf16.vlgmr.msrb.gmra.mxu0 %v4354_v3  ;;  %2256 = vmatmul.bf16.vlgmr.msrb.gmra.mxu1 %v4356_v4  ;;  %v3902_v37 = vld [vmem:[#allocation11 + $0x2c] sm:$0xf]  ;;  %v3253_v40 = vld [vmem:[#allocation11 + $0x38] sm:$0xf0] }
 0x180   :  { %2339 = vmatpush.bf16.msrb.mxu0 %v3348_v63  ;;  %2352 = vmatpush.bf16.msrb.mxu1 %v3476_v47  ;;  %v3395_v63 = vld [vmem:[#allocation11 + $0x148] sm:$0xf]  ;;  %v3940_v47 = vld [vmem:[#allocation11 + $0x154] sm:$0xf0] }
 0x181   :  { %2333 = vmatpush.bf16.msra.mxu3 %v3616_v21  ;;  %v3396_v1 = vor.u32 %v3940_v47, %v3395_v63 }
 0x182   :  { %v1343_v28 = vpop.f32.mrf.mxu2  ;;  %v1356_v29 = vpop.f32.mrf.mxu3 }
 0x183   :  { %v3236_v29 = vor.u32 %v3900_v17, %v3235_v13  ;;  %v3604_v17 = vor.u32 %v3992_v5, %v3603_v2  ;;  %v3651_v2 = vld [vmem:[#allocation11 + $0x348] sm:$0xf]  ;;  %v4004_v5 = vld [vmem:[#allocation11 + $0x354] sm:$0xf0] }
 0x184   :  { %2340 = vmatpush.bf16.msrb.mxu0 %v3332_v11  ;;  %2353 = vmatpush.bf16.msrb.mxu1 %v3460_v12  ;;  %v1428_v11 = vpack.i.b16 %v4362_v25, %v4362_v25  ;;  %v3380_v12 = vor.u32 %v3936_v39, %v3379_v38  ;;  %v3364_v25 = vor.u32 %v3932_v19, %v3363_v18  ;;  %v3731_v38 = vld [vmem:[#allocation11 + $0x3e8] sm:$0xf] }
 0x185   :  { %v3587_v19 = vld [vmem:[#allocation11 + $0x2c8] sm:$0xf] }
 0x186   :  { %v1430_v31 = vperm.slane %v1428_v11, 0  ;;  %v3413_v11 = vld [vmem:[#allocation11 + $0x178] sm:$0xf0] }
 0x188   :  { %2341 = vmatpush.bf16.msrb.mxu0 %v3316_v32  ;;  %2354 = vmatpush.bf16.msrb.mxu1 %v3444_v33  ;;  %v3352_v32 = vor.u32 %v3926_v22, %v3349_v16  ;;  %v3480_v33 = vor.u32 %v3958_v24, %v3477_v26  ;;  %v1438_v43 = vunpack.c.l.bf16 %v1430_v31  ;;  %v3988_v22 = vld [vmem:[#allocation11 + $0x2d4] sm:$0xf0]  ;;  %v3416_v24 = vor.u32 %v3942_v10, %v3413_v11  ;;  %v3715_v26 = vld [vmem:[#allocation11 + $0x3c8] sm:$0xf] }
 0x189   :  { %v3588_v31 = vor.u32 %v3988_v22, %v3587_v19  ;;  %v3990_v19 = vld [vmem:[#allocation11 + $0x2ec] sm:$0xf]  ;;  %v3605_v22 = vld [vmem:[#allocation11 + $0x2f8] sm:$0xf0] }
 0x18c   :  { %2342 = vmatpush.bf16.msrb.mxu0 %v3300_v48  ;;  %2355 = vmatpush.bf16.msrb.mxu1 %v3428_v49  ;;  %v3918_v48 = vld [vmem:[#allocation11 + $0xac] sm:$0xf] }
 0x18d   :  { %v3320_v21 = vor.u32 %v3918_v48, %v3317_v51  ;;  %v3980_v48 = vld [vmem:[#allocation11 + $0x294] sm:$0xf0]  ;;  %v3683_v51 = vld [vmem:[#allocation11 + $0x388] sm:$0xf] }
 0x18f   :  { %v1367_v56 = vpop.f32.mrf.mxu0  ;;  %v1380_v57 = vpop.f32.mrf.mxu1  ;;  %2295 = vmatmul.bf16.vlgmr.msra.gmra.mxu0 %v4354_v3  ;;  %2308 = vmatmul.bf16.vlgmr.msra.gmra.mxu1 %v4356_v4 }
 0x190   :  { %2343 = vmatpush.bf16.msrb.mxu0 %v3284_v58  ;;  %2356 = vmatpush.bf16.msrb.mxu1 %v3412_v61  ;;  %v1381_v14 = vadd.f32 %v1380_v57, %v1367_v56  ;;  %v3448_v56 = vor.u32 %v3950_v52, %v3445_v53  ;;  %v3914_v57 = vld [vmem:[#allocation11 + $0x8c] sm:$0xf]  ;;  %v3301_v61 = vld [vmem:[#allocation11 + $0x98] sm:$0xf0]  ;;  %v4012_v52 = vld [vmem:[#allocation11 + $0x394] sm:$0xf0] }
 0x191   :  { %v3898_v53 = vld [vmem:[#allocation11 + $0xc] sm:$0xf] }
 0x194   :  { %2344 = vmatpush.bf16.msrb.mxu0 %v3268_v0  ;;  %2357 = vmatpush.bf16.msrb.mxu1 %v3396_v1  ;;  %v3304_v0 = vor.u32 %v3914_v57, %v3301_v61  ;;  %v3432_v1 = vor.u32 %v3946_v62, %v3429_v46  ;;  %v3976_v61 = vld [vmem:[#allocation11 + $0x274] sm:$0xf0]  ;;  %v3667_v62 = vld [vmem:[#allocation11 + $0x368] sm:$0xf] }
 0x195   :  { %v4008_v46 = vld [vmem:[#allocation11 + $0x374] sm:$0xf0] }
 0x197   :  { %v1369_v7 = vpop.f32.mrf.mxu0  ;;  %v1382_v8 = vpop.f32.mrf.mxu1 }
 0x198   :  { %2345 = vmatpush.bf16.msrb.mxu0 %v3252_v9  ;;  %2358 = vmatpush.bf16.msrb.mxu1 %v3380_v12  ;;  %v4024_v7 = vld [vmem:[#allocation11 + $0x3f4] sm:$0xf0]  ;;  %v3910_v8 = vld [vmem:[#allocation11 + $0x6c] sm:$0xf]  ;;  %v3285_v9 = vld [vmem:[#allocation11 + $0x78] sm:$0xf0] }
 0x199   :  { %v3732_v18 = vor.u32 %v4024_v7, %v3731_v38  ;;  %v3288_v16 = vor.u32 %v3910_v8, %v3285_v9  ;;  %v3968_v7 = vld [vmem:[#allocation11 + $0x234] sm:$0xf0]  ;;  %v3635_v8 = vld [vmem:[#allocation11 + $0x328] sm:$0xf] }
 0x19a   :  { %v1393_v27 = vpop.f32.mrf.mxu2  ;;  %v1406_v28 = vpop.f32.mrf.mxu3  ;;  %v4000_v9 = vld [vmem:[#allocation11 + $0x334] sm:$0xf0] }
 0x19b   :  { %v1394_v30 = vadd.f32 %v1393_v27, %v1381_v14  ;;  %v4020_v27 = vld [vmem:[#allocation11 + $0x3d4] sm:$0xf0]  ;;  %v3636_v11 = vor.u32 %v4000_v9, %v3635_v8 }
 0x19c   :  { %2346 = vmatpush.bf16.msrb.mxu0 %v3236_v29  ;;  %2359 = vmatpush.bf16.msrb.mxu1 %v3364_v25  ;;  %v3269_v29 = vld [vmem:[#allocation11 + $0x58] sm:$0xf0]  ;;  %v3716_v25 = vor.u32 %v4020_v27, %v3715_v26 }
 0x19d   :  { %v1407_v36 = vadd.f32 %v1406_v28, %v1394_v30  ;;  %v3906_v28 = vld [vmem:[#allocation11 + $0x4c] sm:$0xf] }
 0x19e   :  { %v3938_v30 = vld [vmem:[#allocation11 + $0x14c] sm:$0xf]  ;;  %v3272_v34 = vor.u32 %v3906_v28, %v3269_v29  ;;  %v3589_v29 = vld [vmem:[#allocation11 + $0x2d8] sm:$0xf0] }
 0x19f   :  { %v1411_v41 = vpack.c.bf16 %v1407_v36, %v1355_v35  ;;  %2347 = vmatmul.bf16.vlgmr.msrb.gmra.mxu0 %v4354_v3  ;;  %2360 = vmatmul.bf16.vlgmr.msrb.gmra.mxu1 %v4356_v4  ;;  %v3400_v35 = vor.u32 %v3938_v30, %v3397_v15  ;;  %v3699_v36 = vld [vmem:[#allocation11 + $0x3a8] sm:$0xf]  ;;  %v3986_v28 = vld [vmem:[#allocation11 + $0x2cc] sm:$0xf]  ;;  %v3717_v15 = vld [vmem:[#allocation11 + $0x3d8] sm:$0xf0] }
 0x1a0   :  { %2391 = vmatpush.bf16.msra.mxu0 %v3352_v32  ;;  %2404 = vmatpush.bf16.msra.mxu1 %v3480_v33  ;;  %v3571_v32 = vld [vmem:[#allocation11 + $0x2a8] sm:$0xf]  ;;  %v3984_v33 = vld [vmem:[#allocation11 + $0x2b4] sm:$0xf0]  ;;  %v4018_v30 = vld [vmem:[#allocation11 + $0x3cc] sm:$0xf] }
 0x1a1   :  { %v1433_v49 = vunpack.c.l.bf16 %v1411_v41  ;;  %v1434_v50 = vunpack.c.h.bf16 %v1411_v41  ;;  %v3934_v41 = vld [vmem:[#allocation11 + $0x12c] sm:$0xf] }
 0x1a2   :  { %v1395_v60 = vpop.f32.mrf.mxu2  ;;  %v1408_v54 = vpop.f32.mrf.mxu3 }
 0x1a3   :  { %v1441_v20 = vadd.f32 %v1437_v42, %v1433_v49  ;;  %v1442_v55 = vadd.f32 %v1438_v43, %v1434_v50  ;;  %v3381_v42 = vld [vmem:[#allocation11 + $0x138] sm:$0xf0]  ;;  %v3572_v43 = vor.u32 %v3984_v33, %v3571_v32  ;;  %v3256_v49 = vor.u32 %v3902_v37, %v3253_v40  ;;  %v3930_v54 = vld [vmem:[#allocation11 + $0x10c] sm:$0xf] }
 0x1a4   :  { %2392 = vmatpush.bf16.msra.mxu0 %v3336_v44  ;;  %2405 = vmatpush.bf16.msra.mxu1 %v3464_v45  ;;  %v3700_v44 = vor.u32 %v4016_v59, %v3699_v36  ;;  %v3555_v45 = vld [vmem:[#allocation11 + $0x288] sm:$0xf]  ;;  %v3384_v50 = vor.u32 %v3934_v41, %v3381_v42  ;;  %v3237_v60 = vld [vmem:[#allocation11 + $0x18] sm:$0xf0]  ;;  %v3982_v32 = vld [vmem:[#allocation11 + $0x2ac] sm:$0xf] }
 0x1a5   :  { %v1444_v58 = vpack.c.bf16 %v1442_v55, %v1441_v20  ;;  %v3365_v20 = vld [vmem:[#allocation11 + $0x118] sm:$0xf0]  ;;  %v3556_v55 = vor.u32 %v3980_v48, %v3555_v45  ;;  %v3240_v57 = vor.u32 %v3898_v53, %v3237_v60  ;;  %v3978_v37 = vld [vmem:[#allocation11 + $0x28c] sm:$0xf] }
 0x1a6   :  { %v3573_v33 = vld [vmem:[#allocation11 + $0x2b8] sm:$0xf0]  ;;  %v4010_v41 = vld [vmem:[#allocation11 + $0x38c] sm:$0xf] }
 0x1a7   :  { %v1447_v63 = vunpack.c.l.bf16 %v1444_v58  ;;  %v1448_v47 = vunpack.c.h.bf16 %v1444_v58  ;;  %v3368_v58 = vor.u32 %v3930_v54, %v3365_v20  ;;  %v3576_v36 = vor.u32 %v3982_v32, %v3573_v33  ;;  %v3557_v40 = vld [vmem:[#allocation11 + $0x298] sm:$0xf0]  ;;  %v3974_v45 = vld [vmem:[#allocation11 + $0x26c] sm:$0xf] }
 0x1a8   :  { %2393 = vmatpush.bf16.msra.mxu0 %v3320_v21  ;;  %2406 = vmatpush.bf16.msra.mxu1 %v3448_v56  ;;  %v3684_v21 = vor.u32 %v4012_v52, %v3683_v51  ;;  %v3539_v56 = vld [vmem:[#allocation11 + $0x268] sm:$0xf]  ;;  %v3685_v42 = vld [vmem:[#allocation11 + $0x398] sm:$0xf0]  ;;  %v3970_v53 = vld [vmem:[#allocation11 + $0x24c] sm:$0xf] }
 0x1a9   :  { %v1451_v39 = vmul.f32 0.20019531, %v1447_v63  ;;  %v1452_v6 = vmul.f32 0.20019531, %v1448_v47  ;;  %v3541_v48 = vld [vmem:[#allocation11 + $0x278] sm:$0xf0]  ;;  %v4002_v54 = vld [vmem:[#allocation11 + $0x34c] sm:$0xf] }
 0x1aa   :  { %v3544_v51 = vor.u32 %v3974_v45, %v3541_v48  ;;  %v3525_v60 = vld [vmem:[#allocation11 + $0x258] sm:$0xf0] }
 0x1ab   :  { %v1461_v12 = vmax.f32 %v1447_v63, %v1451_v39  ;;  %v1462_v13 = vmax.f32 %v1448_v47, %v1452_v6  ;;  %v3540_v63 = vor.u32 %v3976_v61, %v3539_v56  ;;  %v3668_v47 = vor.u32 %v4008_v46, %v3667_v62  ;;  %v3507_v6 = vld [vmem:[#allocation11 + $0x228] sm:$0xf]  ;;  %v3653_v20 = vld [vmem:[#allocation11 + $0x358] sm:$0xf0]  ;;  %v3966_v56 = vld [vmem:[#allocation11 + $0x22c] sm:$0xf] }
 0x1ac   :  { %2394 = vmatpush.bf16.msra.mxu0 %v3304_v0  ;;  %2407 = vmatpush.bf16.msra.mxu1 %v3432_v1  ;;  %v3523_v0 = vld [vmem:[#allocation11 + $0x248] sm:$0xf]  ;;  %v3972_v1 = vld [vmem:[#allocation11 + $0x254] sm:$0xf0]  ;;  %v3652_v39 = vor.u32 %v4004_v5, %v3651_v2  ;;  %v3508_v10 = vor.u32 %v3968_v7, %v3507_v6  ;;  %v3637_v61 = vld [vmem:[#allocation11 + $0x338] sm:$0xf0] }
 0x1ad   :  { %v4379_v23 = vpack.c.bf16 %v1461_v12, %v1461_v12  ;;  %v4381_v14 = vpack.c.bf16 %v1462_v13, %v1462_v13  ;;  %v3524_v38 = vor.u32 %v3972_v1, %v3523_v0  ;;  %v3491_v12 = vld [vmem:[#allocation11 + $0x208] sm:$0xf]  ;;  %v3964_v13 = vld [vmem:[#allocation11 + $0x214] sm:$0xf0]  ;;  %v3994_v0 = vld [vmem:[#allocation11 + $0x30c] sm:$0xf] }
 0x1ae   :  { %v3621_v1 = vld [vmem:[#allocation11 + $0x318] sm:$0xf0] }
 0x1af   :  { %2269 = vmatmul.bf16.vlgmr.msrb.gmra.mxu2 %v4379_v23  ;;  %2282 = vmatmul.bf16.vlgmr.msrb.gmra.mxu3 %v4381_v14  ;;  %v3624_v5 = vor.u32 %v3994_v0, %v3621_v1 }
 0x1b0   :  { %2365 = vmatpush.bf16.msrb.mxu2 %v3604_v17  ;;  %2378 = vmatpush.bf16.msrb.mxu3 %v3732_v18  ;;  %v3619_v17 = vld [vmem:[#allocation11 + $0x308] sm:$0xf]  ;;  %v3996_v18 = vld [vmem:[#allocation11 + $0x314] sm:$0xf0] }
 0x1b1   :  { %2395 = vmatpush.bf16.msra.mxu0 %v3288_v16  ;;  %2408 = vmatpush.bf16.msra.mxu1 %v3416_v24  ;;  %v4022_v16 = vld [vmem:[#allocation11 + $0x3ec] sm:$0xf]  ;;  %v3733_v24 = vld [vmem:[#allocation11 + $0x3f8] sm:$0xf0]  ;;  %v3620_v26 = vor.u32 %v3996_v18, %v3619_v17 }
 0x1b2   :  { %v3736_v27 = vor.u32 %v4022_v16, %v3733_v24 }
 0x1b4   :  { %2366 = vmatpush.bf16.msrb.mxu2 %v3588_v31  ;;  %2379 = vmatpush.bf16.msrb.mxu3 %v3716_v25  ;;  %v3592_v31 = vor.u32 %v3986_v28, %v3589_v29  ;;  %v3720_v25 = vor.u32 %v4018_v30, %v3717_v15 }
 0x1b5   :  { %2396 = vmatpush.bf16.msra.mxu0 %v3272_v34  ;;  %2409 = vmatpush.bf16.msra.mxu1 %v3400_v35  ;;  %v4014_v34 = vld [vmem:[#allocation11 + $0x3ac] sm:$0xf]  ;;  %v3701_v35 = vld [vmem:[#allocation11 + $0x3b8] sm:$0xf0] }
 0x1b6   :  { %v3704_v59 = vor.u32 %v4014_v34, %v3701_v35 }
 0x1b8   :  { %2367 = vmatpush.bf16.msrb.mxu2 %v3572_v43  ;;  %2380 = vmatpush.bf16.msrb.mxu3 %v3700_v44  ;;  %v3560_v43 = vor.u32 %v3978_v37, %v3557_v40  ;;  %v3688_v44 = vor.u32 %v4010_v41, %v3685_v42 }
 0x1b9   :  { %2397 = vmatpush.bf16.msra.mxu0 %v3256_v49  ;;  %2410 = vmatpush.bf16.msra.mxu1 %v3384_v50  ;;  %v4006_v49 = vld [vmem:[#allocation11 + $0x36c] sm:$0xf]  ;;  %v3669_v50 = vld [vmem:[#allocation11 + $0x378] sm:$0xf0] }
 0x1ba   :  { %v3672_v52 = vor.u32 %v4006_v49, %v3669_v50 }
 0x1bc   :  { %2368 = vmatpush.bf16.msrb.mxu2 %v3556_v55  ;;  %2381 = vmatpush.bf16.msrb.mxu3 %v3684_v21  ;;  %v3528_v55 = vor.u32 %v3970_v53, %v3525_v60  ;;  %v3656_v21 = vor.u32 %v4002_v54, %v3653_v20 }
 0x1bd   :  { %2398 = vmatpush.bf16.msra.mxu0 %v3240_v57  ;;  %2411 = vmatpush.bf16.msra.mxu1 %v3368_v58  ;;  %v3509_v57 = vld [vmem:[#allocation11 + $0x238] sm:$0xf0]  ;;  %v3998_v58 = vld [vmem:[#allocation11 + $0x32c] sm:$0xf] }
 0x1be   :  { %v3512_v62 = vor.u32 %v3966_v56, %v3509_v57  ;;  %v3640_v46 = vor.u32 %v3998_v58, %v3637_v61 }
 0x1bf   :  { %2321 = vmatmul.bf16.vlgmr.msra.gmra.mxu2 %v4379_v23  ;;  %2334 = vmatmul.bf16.vlgmr.msra.gmra.mxu3 %v4381_v14 }
 0x1c0   :  { %2369 = vmatpush.bf16.msrb.mxu2 %v3540_v63  ;;  %2382 = vmatpush.bf16.msrb.mxu3 %v3668_v47  ;;  %v3962_v63 = vld [vmem:[#allocation11 + $0x20c] sm:$0xf]  ;;  %v3493_v47 = vld [vmem:[#allocation11 + $0x218] sm:$0xf0] }
 0x1c1   :  { %2399 = vmatmul.bf16.vlgmr.msra.gmra.mxu0 %v4354_v3  ;;  %2412 = vmatmul.bf16.vlgmr.msra.gmra.mxu1 %v4356_v4  ;;  %v3492_v3 = vor.u32 %v3964_v13, %v3491_v12  ;;  %v3608_v4 = vor.u32 %v3990_v19, %v3605_v22  ;;  %v3496_v2 = vor.u32 %v3962_v63, %v3493_v47  ;;  %v2451_v63 = vld [vmem:[#allocation1 + $0x1b] sm:$0xff]  ;;  %v2500_v47 = vld [vmem:[#allocation13] sm:$0xf] }
 0x1c4   :  { %2370 = vmatpush.bf16.msrb.mxu2 %v3524_v38  ;;  %2383 = vmatpush.bf16.msrb.mxu3 %v3652_v39 }
 0x1c8   :  { %2371 = vmatpush.bf16.msrb.mxu2 %v3508_v10  ;;  %2384 = vmatpush.bf16.msrb.mxu3 %v3636_v11 }
 0x1cc   :  { %2372 = vmatpush.bf16.msrb.mxu2 %v3492_v3  ;;  %2385 = vmatpush.bf16.msrb.mxu3 %v3620_v26  ;;  %v2448_v26 = vld [vmem:[#allocation1] sm:$0xff] }
 0x1cd   :  { %v2452_v28 = vpack.i.b16 %v2448_v26, %v2448_v26 }
 0x1cf   :  { %2373 = vmatmul.bf16.vlgmr.msrb.gmra.mxu2 %v4379_v23  ;;  %2386 = vmatmul.bf16.vlgmr.msrb.gmra.mxu3 %v4381_v14  ;;  %v2454_v33 = vperm.slane %v2452_v28, 0 }
 0x1d0   :  { %2417 = vmatpush.bf16.msra.mxu2 %v3608_v4  ;;  %2430 = vmatpush.bf16.msra.mxu3 %v3736_v27 }
 0x1d1   :  { %v2468_v41 = vunpack.c.l.bf16 %v2454_v33 }
 0x1d4   :  { %2418 = vmatpush.bf16.msra.mxu2 %v3592_v31  ;;  %2431 = vmatpush.bf16.msra.mxu3 %v3720_v25 }
 0x1d8   :  { %2419 = vmatpush.bf16.msra.mxu2 %v3576_v36  ;;  %2432 = vmatpush.bf16.msra.mxu3 %v3704_v59 }
 0x1dc   :  { %2420 = vmatpush.bf16.msra.mxu2 %v3560_v43  ;;  %2433 = vmatpush.bf16.msra.mxu3 %v3688_v44 }
 0x1e0   :  { %2421 = vmatpush.bf16.msra.mxu2 %v3544_v51  ;;  %2434 = vmatpush.bf16.msra.mxu3 %v3672_v52 }
 0x1e4   :  { %2422 = vmatpush.bf16.msra.mxu2 %v3528_v55  ;;  %2435 = vmatpush.bf16.msra.mxu3 %v3656_v21 }
 0x1e8   :  { %2423 = vmatpush.bf16.msra.mxu2 %v3512_v62  ;;  %2436 = vmatpush.bf16.msra.mxu3 %v3640_v46  ;;  %v2450_v46 = vld [vmem:[#allocation1 + $0x12] sm:$0xff] }
 0x1ec   :  { %2424 = vmatpush.bf16.msra.mxu2 %v3496_v2  ;;  %2437 = vmatpush.bf16.msra.mxu3 %v3624_v5  ;;  %v2458_v2 = vpack.i.b16 %v2450_v46, %v2450_v46  ;;  %v2461_v5 = vpack.i.b16 %v2451_v63, %v2451_v63 }
 0x1ef   :  { %2425 = vmatmul.bf16.vlgmr.msra.gmra.mxu2 %v4379_v23  ;;  %2438 = vmatmul.bf16.vlgmr.msra.gmra.mxu3 %v4381_v14  ;;  %v2449_v14 = vld [vmem:[#allocation1 + $0x9] sm:$0xff] }
 0x1f0   :  { %v2455_v29 = vpack.i.b16 %v2449_v14, %v2449_v14  ;;  %2502 = vst [vmem:[#allocation1] ss:$9 sm:$0xff] %v2500_v47 }
 0x1f2   :  { %v2457_v34 = vperm.slane %v2455_v29, 0 }
 0x1f4   :  { %v2469_v42 = vunpack.c.l.bf16 %v2457_v34 }
 0x1f7   :  { %v2503_v0 = vld [vmem:[#allocation1] sm:$0xff]  ;;  %v2504_v1 = vld [vmem:[#allocation1 + $0x9] sm:$0xff] }
 0x1fc   :  { %v2244_v38 = vpop.f32.mrf.mxu0  ;;  %v2257_v39 = vpop.f32.mrf.mxu1 }
 0x1fd   :  { %v2258_v6 = vadd.f32 %v2257_v39, %v2244_v38 }
 0x204   :  { %v2246_v7 = vpop.f32.mrf.mxu0  ;;  %v2259_v8 = vpop.f32.mrf.mxu1 }
 0x20c   :  { %v2296_v9 = vpop.f32.mrf.mxu0  ;;  %v2309_v10 = vpop.f32.mrf.mxu1 }
 0x20d   :  { %v2310_v30 = vadd.f32 %v2309_v10, %v2296_v9  ;;  %v2460_v9 = vperm.slane %v2458_v2, 0  ;;  %v2463_v10 = vperm.slane %v2461_v5, 0 }
 0x214   :  { %v2298_v11 = vpop.f32.mrf.mxu0  ;;  %v2311_v12 = vpop.f32.mrf.mxu1 }
 0x21c   :  { %v2348_v13 = vpop.f32.mrf.mxu0  ;;  %v2361_v17 = vpop.f32.mrf.mxu1 }
 0x21d   :  { %v2362_v18 = vadd.f32 %v2361_v17, %v2348_v13  ;;  %v2470_v17 = vunpack.c.l.bf16 %v2460_v9 }
 0x224   :  { %v2350_v19 = vpop.f32.mrf.mxu0  ;;  %v2363_v22 = vpop.f32.mrf.mxu1 }
 0x225   :  { %v2471_v19 = vunpack.c.l.bf16 %v2463_v10 }
 0x232   :  { %v2270_v16 = vpop.f32.mrf.mxu2  ;;  %v2283_v24 = vpop.f32.mrf.mxu3 }
 0x233   :  { %v2271_v15 = vadd.f32 %v2270_v16, %v2258_v6 }
 0x235   :  { %v2284_v35 = vadd.f32 %v2283_v24, %v2271_v15 }
 0x23a   :  { %v2272_v3 = vpop.f32.mrf.mxu2  ;;  %v2285_v23 = vpop.f32.mrf.mxu3 }
 0x23e   :  { %v2400_v4 = vpop.f32.mrf.mxu0  ;;  %v2413_v27 = vpop.f32.mrf.mxu1 }
 0x23f   :  { %v2414_v38 = vadd.f32 %v2413_v27, %v2400_v4 }
 0x242   :  { %v2322_v31 = vpop.f32.mrf.mxu2  ;;  %v2335_v25 = vpop.f32.mrf.mxu3 }
 0x243   :  { %v2323_v32 = vadd.f32 %v2322_v31, %v2310_v30 }
 0x245   :  { %v2336_v36 = vadd.f32 %v2335_v25, %v2323_v32  ;;  %v2505_v25 = vld [vmem:[#allocation1 + $0x12] sm:$0xff]  ;;  %v2506_v32 = vld [vmem:[#allocation1 + $0x1b] sm:$0xff] }
 0x246   :  { %v2402_v59 = vpop.f32.mrf.mxu0  ;;  %v2415_v37 = vpop.f32.mrf.mxu1 }
 0x247   :  { %v2443_v40 = vpack.c.bf16 %v2336_v36, %v2284_v35 }
 0x249   :  { %v2464_v43 = vunpack.c.l.bf16 %v2443_v40  ;;  %v2465_v44 = vunpack.c.h.bf16 %v2443_v40 }
 0x24a   :  { %v2324_v45 = vpop.f32.mrf.mxu2  ;;  %v2337_v48 = vpop.f32.mrf.mxu3 }
 0x24b   :  { %v2472_v49 = vadd.f32 %v2468_v41, %v2464_v43  ;;  %v2473_v50 = vadd.f32 %v2469_v42, %v2465_v44 }
 0x24d   :  { %v2476_v51 = vpack.c.bf16 %v2473_v50, %v2472_v49 }
 0x24f   :  { %v2478_v52 = vunpack.c.l.bf16 %v2476_v51  ;;  %v2479_v53 = vunpack.c.h.bf16 %v2476_v51 }
 0x251   :  { %v2482_v60 = vmul.f32 0.20019531, %v2478_v52  ;;  %v2483_v54 = vmul.f32 0.20019531, %v2479_v53 }
 0x252   :  { %v2374_v20 = vpop.f32.mrf.mxu2  ;;  %v2387_v55 = vpop.f32.mrf.mxu3 }
 0x253   :  { %v2492_v21 = vmax.f32 %v2478_v52, %v2482_v60  ;;  %v2493_v56 = vmax.f32 %v2479_v53, %v2483_v54  ;;  %v2375_v39 = vadd.f32 %v2374_v20, %v2362_v18 }
 0x255   :  { %v2496_v57 = vpack.c.bf16 %v2492_v21, %v2492_v21  ;;  %v2497_v58 = vpack.c.bf16 %v2493_v56, %v2493_v56  ;;  %v2388_v11 = vadd.f32 %v2387_v55, %v2375_v39 }
 0x257   :  { %2518 = vmatpush.bf16.xpose.msrb.mxu0 %v2496_v57  ;;  %2531 = vmatpush.bf16.xpose.msrb.mxu1 %v2497_v58 }
 0x25a   :  { %v2376_v61 = vpop.f32.mrf.mxu2  ;;  %v2389_v62 = vpop.f32.mrf.mxu3 }
 0x25e   :  { %2519 = vmatmul.bf16.vlgmr.msrb.gmra.mxu0 %v2503_v0  ;;  %2532 = vmatmul.bf16.vlgmr.msrb.gmra.mxu1 %v2504_v1 }
 0x272   :  { %v2426_v6 = vpop.f32.mrf.mxu2  ;;  %v2439_v7 = vpop.f32.mrf.mxu3 }
 0x273   :  { %v2427_v8 = vadd.f32 %v2426_v6, %v2414_v38 }
 0x275   :  { %v2440_v12 = vadd.f32 %v2439_v7, %v2427_v8 }
 0x277   :  { %v2444_v13 = vpack.c.bf16 %v2440_v12, %v2388_v11 }
 0x279   :  { %v2466_v22 = vunpack.c.l.bf16 %v2444_v13  ;;  %v2467_v16 = vunpack.c.h.bf16 %v2444_v13 }
 0x27a   :  { %v2428_v24 = vpop.f32.mrf.mxu2  ;;  %v2441_v3 = vpop.f32.mrf.mxu3 }
 0x27b   :  { %v2474_v23 = vadd.f32 %v2470_v17, %v2466_v22  ;;  %v2475_v26 = vadd.f32 %v2471_v19, %v2467_v16 }
 0x27d   :  { %v2477_v14 = vpack.c.bf16 %v2475_v26, %v2474_v23 }
 0x27f   :  { %v2480_v28 = vunpack.c.l.bf16 %v2477_v14  ;;  %v2481_v4 = vunpack.c.h.bf16 %v2477_v14 }
 0x281   :  { %v2484_v18 = vmul.f32 0.20019531, %v2480_v28  ;;  %v2485_v27 = vmul.f32 0.20019531, %v2481_v4 }
 0x283   :  { %v2494_v29 = vmax.f32 %v2480_v28, %v2484_v18  ;;  %v2495_v30 = vmax.f32 %v2481_v4, %v2485_v27 }
 0x285   :  { %v2498_v15 = vpack.c.bf16 %v2494_v29, %v2494_v29  ;;  %v2499_v31 = vpack.c.bf16 %v2495_v30, %v2495_v30 }
 0x287   :  { %2544 = vmatpush.bf16.xpose.msrb.mxu2 %v2498_v15  ;;  %2557 = vmatpush.bf16.xpose.msrb.mxu3 %v2499_v31 }
 0x28e   :  { %2545 = vmatmul.bf16.vlgmr.msrb.gmra.mxu2 %v2505_v25  ;;  %2558 = vmatmul.bf16.vlgmr.msrb.gmra.mxu3 %v2506_v32 }
 0x2db   :  { %v2520_v33 = vpop.f32.mrf.mxu0  ;;  %v2533_v34 = vpop.f32.mrf.mxu1 }
 0x2dc   :  { %v2534_v59 = vadd.f32 %v2533_v34, %v2520_v33 }
 0x2e3   :  { %v2522_v35 = vpop.f32.mrf.mxu0  ;;  %v2535_v36 = vpop.f32.mrf.mxu1 }
 0x311   :  { %v2546_v37 = vpop.f32.mrf.mxu2  ;;  %v2559_v40 = vpop.f32.mrf.mxu3 }
 0x312   :  { %v2547_v41 = vadd.f32 %v2546_v37, %v2534_v59 }
 0x314   :  { %v2560_v42 = vadd.f32 %v2559_v40, %v2547_v41 }
 0x316   :  { %2564 = vst.msk [vmem:[#allocation14] sm:$0x1] %vm2563_vm0, %v2560_v42 }
 0x317   :  { %2575 = dma.vmem_to_hbm [thread:$0]  %s2571_s15, 16, %s2573_s18, [#allocation4]  }
 0x319   :  { %v2548_v43 = vpop.f32.mrf.mxu2  ;;  %v2561_v44 = vpop.f32.mrf.mxu3 }
 0x31a   :  { %4235 = dma.done.wait [#allocation4], 16  }
 0x31b   :  { %4236 = vsyncadd [#allocation4], 4294967280 }
 0x31c   :  { %2580 = vsyncpa [#allocation3], 1 }
 0x31d   :  { %2581 = vsyncpa [#allocation6], 1 }
 0x31e   :  { %2582 = vsyncpa [#allocation9], 1 }
 0x31f   :  { %2583 = vsyncpa [#allocation12], 1 }
 0x320   :  { %2584 = vsyncpa [#allocation4], 1 }

</bundles_post_ra>
